<compile_context>
chip_gen: v5e
topology: v5e:2x2
jax: 0.10.0
libtpu: 0.0.40
codegen_flags: <defaults>
</compile_context>

<pallas_src>
import numpy as np
import jax
import jax.numpy as jnp
from jax.experimental import pallas as pl
from jax.experimental.pallas import tpu as pltpu

# ----------------------------- static config ------------------------------
GRID_CONFIG = {
    'xbound': [-8.0, 8.0, 1.0],     # -> nx = 16
    'ybound': [-8.0, 8.0, 1.0],     # -> ny = 16
    'zbound': [-10.0, 10.0, 20.0],  # -> nz = 1
    'dbound': [1.0, 5.0, 1.0],      # -> D  = 4 depth bins
}
DATA_CONFIG = {'input_size': (128, 128)}
DOWNSAMPLE = 16                     # feature map = 8 x 8
NUMC_INPUT = 32                     # C  (depthnet/featnet input channels)
NUMC_TRANS = 16                     # Ct (transformed image feature channels)
EXTRA_DEPTH_CH = 32                 # extra_depth_net['num_channels'][0]
INTRINSIC_CH = 33                   # 9 + 9 + 3 + 9 + 3

# Static (Python-int) geometry constants -- never enter the jit'd pytree.
NXG = tuple(int(round((b[1] - b[0]) / b[2]))
            for b in (GRID_CONFIG['xbound'], GRID_CONFIG['ybound'],
                      GRID_CONFIG['zbound']))                      # (16, 16, 1)
NVOX = NXG[0] * NXG[1] * NXG[2]                                    # 256
D_BINS = int(np.arange(*GRID_CONFIG['dbound']).shape[0])           # 4
FH = DATA_CONFIG['input_size'][0] // DOWNSAMPLE                    # 8
FW = DATA_CONFIG['input_size'][1] // DOWNSAMPLE                    # 8

TPIX = 128                          # pixel-column tile (lane axis)


# ----------------------------- geometry glue -----------------------------
def gen_dx_bx(xbound, ybound, zbound):
    dx = jnp.array([row[2] for row in [xbound, ybound, zbound]], jnp.float32)
    bx = jnp.array([row[0] + row[2] / 2.0 for row in [xbound, ybound, zbound]],
                   jnp.float32)
    return dx, bx


def create_frustum(input_size, downsample, dbound):
    ogfH, ogfW = input_size
    fH, fW = ogfH // downsample, ogfW // downsample
    ds = jnp.arange(dbound[0], dbound[1], dbound[2], dtype=jnp.float32)
    D = ds.shape[0]
    xs = jnp.linspace(0.0, ogfW - 1, fW, dtype=jnp.float32)
    ys = jnp.linspace(0.0, ogfH - 1, fH, dtype=jnp.float32)
    ds_b = jnp.broadcast_to(ds[:, None, None], (D, fH, fW))
    xs_b = jnp.broadcast_to(xs[None, None, :], (D, fH, fW))
    ys_b = jnp.broadcast_to(ys[None, :, None], (D, fH, fW))
    return jnp.stack([xs_b, ys_b, ds_b], axis=-1)           # (D, fH, fW, 3)


def get_geometry(frustum, rots, trans, intrins, post_rots, post_trans):
    # Same math as LSS_dev.get_geometry -> (B, N, D, H, W, 3) ego-frame points.
    points = frustum[None, None] - post_trans[:, :, None, None, None, :]
    inv_post = jnp.linalg.inv(post_rots)
    points = jnp.einsum('bnij,bndhwj->bndhwi', inv_post, points)
    points = jnp.concatenate(
        [points[..., :2] * points[..., 2:3], points[..., 2:3]], axis=-1)
    combine = jnp.einsum('bnij,bnjk->bnik', rots, jnp.linalg.inv(intrins))
    points = jnp.einsum('bnij,bndhwj->bndhwi', combine, points)
    return points + trans[:, :, None, None, None, :]


# ------------------------------ Pallas kernels ---------------------------
def _head_kernel(x_ref, y_ref, wfs_ref, bfs_ref, wd_ref, bd_ref,
                 vol_ref, dig_ref):
    """Fused featnet / SE-conv / depthnet 1x1 convs + depth softmax +
    depth x feature outer product (LSS volume), all in pixel-on-lane layout."""
    Ct = vol_ref.shape[1]
    x = x_ref[...]                                            # (C, TPIX)
    # fused featnet + SE input_conv: one (Ct+Cmid, C) x (C, TPIX) matmul
    fs = jnp.dot(wfs_ref[...], x,
                 preferred_element_type=jnp.float32) + bfs_ref[...]
    f = fs[:Ct, :]                                            # (Ct, TPIX)
    s = fs[Ct:, :] * y_ref[...]                               # (Cmid, TPIX) * gate
    # TODO(synk): extra_depthnet (mmdet backbone, config unavailable) and the
    # DCNv2+BatchNorm2d block have no in-script definition; treated as identity.
    d = jnp.dot(wd_ref[...], s,
                preferred_element_type=jnp.float32) + bd_ref[...]   # (D, TPIX)
    dig_ref[...] = d                                          # depth logits
    # softmax over depth bins (torch softmax(dim=1) on (BN, D, H, W))
    m = jnp.max(d, axis=0, keepdims=True)
    e = jnp.exp(d - m)
    p = e / jnp.sum(e, axis=0, keepdims=True)                 # (D, TPIX)
    # vectorized outer product, one lane-dense store
    vol_ref[...] = p[:, None, :] * f[None, :, :]              # (D, Ct, TPIX)


def _voxel_pool_kernel(vidx_ref, feat_ref, bev_ref):
    """Scatter-add point features into BEV voxels via a one-hot matmul.
    Output is (Ct, Nvox) with the 256-wide voxel axis on lanes."""
    vidx = vidx_ref[0]                                        # (1, Np), sentinel = NVOX
    feats = feat_ref[0]                                       # (Ct, Np)
    nvox = bev_ref.shape[2]
    npts = feats.shape[1]
    # TODO(synk): at production sizes (nvox ~16K, Np ~100K+) this onehot should
    # be chunked over Np with an accumulator to stay inside VMEM.
    vox_rows = jax.lax.broadcasted_iota(jnp.int32, (nvox, npts), 0)
    onehot = (vox_rows == vidx).astype(jnp.float32)           # (Nvox, Np)
    bev_ref[0] = jax.lax.dot_general(
        feats, onehot,
        dimension_numbers=(((1,), (1,)), ((), ())),           # contract Np
        preferred_element_type=jnp.float32)                   # (Ct, Nvox)


def head_pallas(xT, y_pixT, w_fused_T, b_fused, wd_T, bd):
    Cfused, C = w_fused_T.shape
    D, Cmid = wd_T.shape
    Ct = Cfused - Cmid
    P = xT.shape[1]                                           # BN*HW
    tpix = TPIX if P % TPIX == 0 else P
    vol, dig = pl.pallas_call(
        _head_kernel,
        out_shape=(jax.ShapeDtypeStruct((D, Ct, P), jnp.float32),
                   jax.ShapeDtypeStruct((D, P), jnp.float32)),
        grid=(P // tpix,),
        in_specs=[
            pl.BlockSpec((C, tpix), lambda i: (0, i)),        # xT
            pl.BlockSpec((Cmid, tpix), lambda i: (0, i)),     # SE gate (per pixel)
            pl.BlockSpec((Cfused, C), lambda i: (0, 0)),      # fused feat+SE W
            pl.BlockSpec((Cfused, 1), lambda i: (0, 0)),      # fused bias
            pl.BlockSpec((D, Cmid), lambda i: (0, 0)),        # depthnet W
            pl.BlockSpec((D, 1), lambda i: (0, 0)),           # depthnet b
        ],
        out_specs=(
            pl.BlockSpec((D, Ct, tpix), lambda i: (0, 0, i)), # LSS volume
            pl.BlockSpec((D, tpix), lambda i: (0, i)),        # depth logits
        ),
        compiler_params=pltpu.CompilerParams(dimension_semantics=("parallel",)),
    )(xT, y_pixT, w_fused_T, b_fused, wd_T, bd)
    return vol, dig


def voxel_pool_pallas(vidx, feats, nvox):
    B, _, Np = vidx.shape
    Ct = feats.shape[1]
    return pl.pallas_call(
        _voxel_pool_kernel,
        out_shape=jax.ShapeDtypeStruct((B, Ct, nvox), jnp.float32),
        grid=(B,),
        in_specs=[
            pl.BlockSpec((1, 1, Np), lambda b: (b, 0, 0)),
            pl.BlockSpec((1, Ct, Np), lambda b: (b, 0, 0)),
        ],
        out_specs=pl.BlockSpec((1, Ct, nvox), lambda b: (b, 0, 0)),
        compiler_params=pltpu.CompilerParams(dimension_semantics=("parallel",)),
    )(vidx, feats)


# ------------------------------- forward ---------------------------------
def lss_bevdepth_forward(params, x, rots, trans, intrins, post_rots, post_trans,
                         depth_gt):
    del depth_gt  # only used for the depth loss, not in forward
    B, N, C, H, W = x.shape
    BN, HW = B * N, H * W
    Ct, Cmid, D = NUMC_TRANS, EXTRA_DEPTH_CH, D_BINS
    nx, ny, nz = NXG[0], NXG[1], NXG[2]

    # NCHW -> channel-on-sublane / pixel-on-lane layout for the head kernel
    xT = x.reshape(BN, C, HW).transpose(1, 0, 2).reshape(C, BN * HW)
    xT = xT.astype(jnp.float32)

    # camera-parameter SE gate (tiny; matches SELikeModule.fc in eval mode)
    cam_params = jnp.concatenate([
        intrins.reshape(BN, -1), post_rots.reshape(BN, -1),
        post_trans.reshape(BN, -1), rots.reshape(BN, -1),
        trans.reshape(BN, -1)], axis=1)                        # (BN, 33)
    cp = (cam_params - params['se_bn_mean']) / jnp.sqrt(params['se_bn_var'] + 1e-5)
    cp = cp * params['se_bn_gamma'] + params['se_bn_beta']
    y_se = jax.nn.sigmoid(cp @ params['se_fc_w'] + params['se_fc_b'])  # (BN, Cmid)
    y_pixT = jnp.broadcast_to(y_se.T[:, :, None], (Cmid, BN, HW))
    y_pixT = y_pixT.reshape(Cmid, BN * HW)

    # fuse featnet + SE input_conv weights into a single matmul operand
    w_fused_T = jnp.concatenate([params['featnet_w'], params['se_conv_w']],
                                axis=1).T                      # (Ct+Cmid, C)
    b_fused = jnp.concatenate([params['featnet_b'], params['se_conv_b']])[:, None]
    wd_T = params['depthnet_w'].T                              # (D, Cmid)
    bd = params['depthnet_b'][:, None]                         # (D, 1)

    vol, dig = head_pallas(xT, y_pixT, w_fused_T, b_fused, wd_T, bd)

    # (D, Ct, BN*HW) -> per-batch point features (B, Ct, N*D*HW)
    feats = vol.reshape(D, Ct, B, N, HW).transpose(2, 1, 3, 0, 4)
    feats = feats.reshape(B, Ct, N * D * HW)

    # geometry -> voxel indices (3x3 matrix glue, plain JAX)
    geom = get_geometry(params['frustum'], rots, trans, intrins, post_rots,
                        post_trans)
    dx, bx = params['dx'], params['bx']
    coords = ((geom - (bx - dx / 2.0)) / dx).astype(jnp.int32)  # trunc == torch .long()
    vx, vy, vz = coords[..., 0], coords[..., 1], coords[..., 2]
    kept = ((vx >= 0) & (vx < nx) & (vy >= 0) & (vy < ny)
            & (vz >= 0) & (vz < nz))
    flat = vz * (ny * nx) + vy * nx + vx
    vidx = jnp.where(kept, flat, NVOX).astype(jnp.int32)       # sentinel -> dropped
    vidx = vidx.reshape(B, 1, N * D * HW)

    bev = voxel_pool_pallas(vidx, feats, NVOX)                 # (B, Ct, nvox)
    bev = bev.reshape(B, Ct, nz, ny, nx)
    bev_feat = bev.transpose(0, 2, 1, 3, 4).reshape(B, nz * Ct, ny, nx)

    depth = dig.reshape(D, BN, H, W).transpose(1, 0, 2, 3)     # (BN, D, H, W) logits
    return {'bev_feature': bev_feat, 'depth': depth}


# ------------------------- pure-JAX reference (check) ---------------------
def reference_forward(params, x, rots, trans, intrins, post_rots, post_trans,
                      depth_gt):
    del depth_gt
    B, N, C, H, W = x.shape
    BN, HW = B * N, H * W
    Ct, Cmid, D = NUMC_TRANS, EXTRA_DEPTH_CH, D_BINS
    nx, ny, nz = NXG[0], NXG[1], NXG[2]
    xf = x.reshape(BN, C, HW).transpose(0, 2, 1).astype(jnp.float32)
    f = xf @ params['featnet_w'] + params['featnet_b']
    cam_params = jnp.concatenate([
        intrins.reshape(BN, -1), post_rots.reshape(BN, -1),
        post_trans.reshape(BN, -1), rots.reshape(BN, -1),
        trans.reshape(BN, -1)], axis=1)
    cp = (cam_params - params['se_bn_mean']) / jnp.sqrt(params['se_bn_var'] + 1e-5)
    cp = cp * params['se_bn_gamma'] + params['se_bn_beta']
    y_se = jax.nn.sigmoid(cp @ params['se_fc_w'] + params['se_fc_b'])
    s = (xf @ params['se_conv_w'] + params['se_conv_b']) * y_se[:, None, :]
    d = s @ params['depthnet_w'] + params['depthnet_b']                 # (BN, HW, D)
    p = jax.nn.softmax(d, axis=-1)
    vol = p[:, :, :, None] * f[:, :, None, :]                           # (BN, HW, D, Ct)
    volume = vol.reshape(B, N, H, W, D, Ct).transpose(0, 1, 4, 2, 3, 5)

    geom = get_geometry(params['frustum'], rots, trans, intrins, post_rots,
                        post_trans)
    dx, bx = params['dx'], params['bx']
    coords = ((geom - (bx - dx / 2.0)) / dx).astype(jnp.int32)
    vx, vy, vz = coords[..., 0], coords[..., 1], coords[..., 2]
    kept = ((vx >= 0) & (vx < nx) & (vy >= 0) & (vy < ny)
            & (vz >= 0) & (vz < nz))
    flat = vz * (ny * nx) + vy * nx + vx
    vidx = jnp.where(kept, flat, NVOX).reshape(B, -1)
    feats = volume.reshape(B, -1, Ct)
    bidx = jnp.broadcast_to(jnp.arange(B)[:, None], vidx.shape)
    bev = jnp.zeros((B, NVOX + 1, Ct), jnp.float32).at[bidx, vidx].add(feats)
    bev = bev[:, :NVOX].reshape(B, nz, ny, nx, Ct)
    bev_feat = bev.transpose(0, 1, 4, 2, 3).reshape(B, nz * Ct, ny, nx)
    depth = d.reshape(BN, H, W, D).transpose(0, 3, 1, 2)
    return {'bev_feature': bev_feat, 'depth': depth}


# -------------------------------- main ------------------------------------
def make_params(key):
    dx, bx = gen_dx_bx(GRID_CONFIG['xbound'], GRID_CONFIG['ybound'],
                       GRID_CONFIG['zbound'])
    frustum = create_frustum(DATA_CONFIG['input_size'], DOWNSAMPLE,
                             GRID_CONFIG['dbound'])
    C, Ct, Cmid, D = NUMC_INPUT, NUMC_TRANS, EXTRA_DEPTH_CH, D_BINS
    ks = jax.random.split(key, 8)
    p = {
        'dx': dx, 'bx': bx, 'frustum': frustum,
        'featnet_w': jax.random.normal(ks[0], (C, Ct), jnp.float32) * 0.05,
        'featnet_b': jax.random.normal(ks[1], (Ct,), jnp.float32) * 0.01,
        'se_conv_w': jax.random.normal(ks[2], (C, Cmid), jnp.float32) * 0.05,
        'se_conv_b': jax.random.normal(ks[3], (Cmid,), jnp.float32) * 0.01,
        'se_bn_gamma': jnp.ones((INTRINSIC_CH,), jnp.float32),
        'se_bn_beta': jnp.zeros((INTRINSIC_CH,), jnp.float32),
        'se_bn_mean': jnp.zeros((INTRINSIC_CH,), jnp.float32),
        'se_bn_var': jnp.ones((INTRINSIC_CH,), jnp.float32),
        'se_fc_w': jax.random.normal(ks[4], (INTRINSIC_CH, Cmid), jnp.float32) * 0.05,
        'se_fc_b': jax.random.normal(ks[5], (Cmid,), jnp.float32) * 0.01,
        'depthnet_w': jax.random.normal(ks[6], (Cmid, D), jnp.float32) * 0.05,
        'depthnet_b': jax.random.normal(ks[7], (D,), jnp.float32) * 0.01,
    }
    return p


if __name__ == "__main__":
    key = jax.random.PRNGKey(0)
    pkey, *ikeys = jax.random.split(key, 8)
    params = make_params(pkey)

    B, N, C = 2, 2, NUMC_INPUT
    H, W = FH, FW

    x = jax.random.normal(ikeys[0], (B, N, C, H, W), jnp.float32)
    eye = jnp.broadcast_to(jnp.eye(3, dtype=jnp.float32), (B, N, 3, 3))
    rots = eye + 0.01 * jax.random.normal(ikeys[1], (B, N, 3, 3), jnp.float32)
    post_rots = eye + 0.01 * jax.random.normal(ikeys[2], (B, N, 3, 3), jnp.float32)
    intrins = jnp.broadcast_to(
        jnp.array([[40.0, 0.0, 64.0], [0.0, 40.0, 64.0], [0.0, 0.0, 1.0]],
                  jnp.float32), (B, N, 3, 3))
    trans = jax.random.uniform(ikeys[3], (B, N, 3), jnp.float32, -1.0, 1.0)
    post_trans = 0.5 * jax.random.normal(ikeys[4], (B, N, 3), jnp.float32)
    depth_gt = jax.random.normal(ikeys[5], (B, N, H, W), jnp.float32)

    fwd = jax.jit(lss_bevdepth_forward)
    out = fwd(params, x, rots, trans, intrins, post_rots, post_trans, depth_gt)
    jax.block_until_ready(out)

    ref = reference_forward(params, x, rots, trans, intrins, post_rots,
                            post_trans, depth_gt)
    np.testing.assert_allclose(np.asarray(out['depth']), np.asarray(ref['depth']),
                               atol=2e-2, rtol=2e-2)
    np.testing.assert_allclose(np.asarray(out['bev_feature']),
                               np.asarray(ref['bev_feature']),
                               atol=2e-2, rtol=2e-2)
    assert out['bev_feature'].shape == (B, NXG[2] * NUMC_TRANS, NXG[1], NXG[0])
    assert out['depth'].shape == (B * N, D_BINS, H, W)
    print("KERNEL_OK")
</pallas_src>

<mosaic_0001>
module attributes {stable_mosaic.version = 11 : i64} {
  func.func @_head_kernel(%arg0: i32, %arg1: memref<32x128xf32, #tpu.memory_space<vmem>>, %arg2: memref<32x128xf32, #tpu.memory_space<vmem>>, %arg3: memref<48x32xf32, #tpu.memory_space<vmem>>, %arg4: memref<48x1xf32, #tpu.memory_space<vmem>>, %arg5: memref<4x32xf32, #tpu.memory_space<vmem>>, %arg6: memref<4x1xf32, #tpu.memory_space<vmem>>, %arg7: memref<4x16x128xf32, #tpu.memory_space<vmem>>, %arg8: memref<4x128xf32, #tpu.memory_space<vmem>>) attributes {dimension_semantics = [#tpu.dimension_semantics<parallel>], iteration_bounds = array<i64: 2>, scalar_prefetch = 0 : i64, scratch_operands = 0 : i64, tpu.core_type = #tpu.core_type<tc>, window_params = [{transform_indices = @transform_0, window_bounds = array<i64: 32, 128>}, {transform_indices = @transform_1, window_bounds = array<i64: 32, 128>}, {pipeline_mode = #tpu.pipeline_mode<synchronous>, transform_indices = @transform_2, window_bounds = array<i64: 48, 32>}, {pipeline_mode = #tpu.pipeline_mode<synchronous>, transform_indices = @transform_3, window_bounds = array<i64: 48, 1>}, {pipeline_mode = #tpu.pipeline_mode<synchronous>, transform_indices = @transform_4, window_bounds = array<i64: 4, 32>}, {pipeline_mode = #tpu.pipeline_mode<synchronous>, transform_indices = @transform_5, window_bounds = array<i64: 4, 1>}, {transform_indices = @transform_6, window_bounds = array<i64: 4, 16, 128>}, {transform_indices = @transform_7, window_bounds = array<i64: 4, 128>}]} {
    %c0 = arith.constant 0 : index
    %c0_0 = arith.constant 0 : index
    %0 = vector.load %arg1[%c0, %c0_0] : memref<32x128xf32, #tpu.memory_space<vmem>>, vector<32x128xf32>
    %c0_1 = arith.constant 0 : index
    %c0_2 = arith.constant 0 : index
    %1 = vector.load %arg3[%c0_1, %c0_2] : memref<48x32xf32, #tpu.memory_space<vmem>>, vector<48x32xf32>
    %cst = arith.constant dense<0.000000e+00> : vector<48x128xf32>
    %2 = tpu.matmul %1, %0, %cst {dimension_numbers = #tpu.dot_dimension_numbers<[1], [0], [0], [1], [0, 0, 1, 1], [], []>} : vector<48x32xf32>, vector<32x128xf32>, vector<48x128xf32> -> vector<48x128xf32>
    %c0_3 = arith.constant 0 : index
    %c0_4 = arith.constant 0 : index
    %3 = vector.load %arg4[%c0_3, %c0_4] : memref<48x1xf32, #tpu.memory_space<vmem>>, vector<48x1xf32>
    %4 = vector.broadcast %3 : vector<48x1xf32> to vector<48x128xf32>
    %5 = arith.addf %2, %4 : vector<48x128xf32>
    %6 = vector.extract_strided_slice %5 {offsets = [0, 0], sizes = [16, 128], strides = [1, 1]} : vector<48x128xf32> to vector<16x128xf32>
    %7 = vector.extract_strided_slice %5 {offsets = [16, 0], sizes = [32, 128], strides = [1, 1]} : vector<48x128xf32> to vector<32x128xf32>
    %c0_5 = arith.constant 0 : index
    %c0_6 = arith.constant 0 : index
    %8 = vector.load %arg2[%c0_5, %c0_6] : memref<32x128xf32, #tpu.memory_space<vmem>>, vector<32x128xf32>
    %9 = arith.mulf %7, %8 : vector<32x128xf32>
    %c0_7 = arith.constant 0 : index
    %c0_8 = arith.constant 0 : index
    %10 = vector.load %arg5[%c0_7, %c0_8] : memref<4x32xf32, #tpu.memory_space<vmem>>, vector<4x32xf32>
    %cst_9 = arith.constant dense<0.000000e+00> : vector<4x128xf32>
    %11 = tpu.matmul %10, %9, %cst_9 {dimension_numbers = #tpu.dot_dimension_numbers<[1], [0], [0], [1], [0, 0, 1, 1], [], []>} : vector<4x32xf32>, vector<32x128xf32>, vector<4x128xf32> -> vector<4x128xf32>
    %c0_10 = arith.constant 0 : index
    %c0_11 = arith.constant 0 : index
    %12 = vector.load %arg6[%c0_10, %c0_11] : memref<4x1xf32, #tpu.memory_space<vmem>>, vector<4x1xf32>
    %13 = vector.broadcast %12 : vector<4x1xf32> to vector<4x128xf32>
    %14 = arith.addf %11, %13 : vector<4x128xf32>
    %c0_12 = arith.constant 0 : index
    %c0_13 = arith.constant 0 : index
    %15 = vector.load %arg8[%c0_12, %c0_13] : memref<4x128xf32, #tpu.memory_space<vmem>>, vector<4x128xf32>
    tpu.vector_store %arg8[%c0_12, %c0_13], %14 {strides = array<i32>} : memref<4x128xf32, #tpu.memory_space<vmem>>, vector<4x128xf32>,
    %cst_14 = arith.constant dense<0xFF800000> : vector<128xf32>
    %16 = vector.multi_reduction <maximumf>, %14, %cst_14 [0] : vector<4x128xf32> to vector<128xf32>
    %17 = vector.shape_cast %16 : vector<128xf32> to vector<1x128xf32>
    %18 = vector.broadcast %17 : vector<1x128xf32> to vector<4x128xf32>
    %19 = arith.subf %14, %18 : vector<4x128xf32>
    %20 = math.exp %19 : vector<4x128xf32>
    %cst_15 = arith.constant dense<0.000000e+00> : vector<128xf32>
    %21 = vector.multi_reduction <add>, %20, %cst_15 [0] : vector<4x128xf32> to vector<128xf32>
    %22 = vector.shape_cast %21 : vector<128xf32> to vector<1x128xf32>
    %23 = vector.broadcast %22 : vector<1x128xf32> to vector<4x128xf32>
    %24 = arith.divf %20, %23 : vector<4x128xf32>
    %25 = vector.shape_cast %24 : vector<4x128xf32> to vector<4x1x128xf32>
    %26 = vector.shape_cast %6 : vector<16x128xf32> to vector<1x16x128xf32>
    %27 = vector.broadcast %25 : vector<4x1x128xf32> to vector<4x16x128xf32>
    %28 = vector.broadcast %26 : vector<1x16x128xf32> to vector<4x16x128xf32>
    %29 = arith.mulf %27, %28 : vector<4x16x128xf32>
    %c0_16 = arith.constant 0 : index
    %c0_17 = arith.constant 0 : index
    %c0_18 = arith.constant 0 : index
    %30 = vector.load %arg7[%c0_16, %c0_17, %c0_18] : memref<4x16x128xf32, #tpu.memory_space<vmem>>, vector<4x16x128xf32>
    tpu.vector_store %arg7[%c0_16, %c0_17, %c0_18], %29 {strides = array<i32>} : memref<4x16x128xf32, #tpu.memory_space<vmem>>, vector<4x16x128xf32>,
    return
  }
  func.func @transform_0(%arg0: i32) -> (i32, i32) {
    %c0_i32 = arith.constant 0 : i32
    %c0_i32_0 = arith.constant 0 : i32
    return %c0_i32, %arg0 : i32, i32
  }
  func.func @transform_1(%arg0: i32) -> (i32, i32) {
    %c0_i32 = arith.constant 0 : i32
    %c0_i32_0 = arith.constant 0 : i32
    return %c0_i32, %arg0 : i32, i32
  }
  func.func @transform_2(%arg0: i32) -> (i32, i32) {
    %c0_i32 = arith.constant 0 : i32
    %c0_i32_0 = arith.constant 0 : i32
    %c0_i32_1 = arith.constant 0 : i32
    return %c0_i32, %c0_i32_0 : i32, i32
  }
  func.func @transform_3(%arg0: i32) -> (i32, i32) {
    %c0_i32 = arith.constant 0 : i32
    %c0_i32_0 = arith.constant 0 : i32
    %c0_i32_1 = arith.constant 0 : i32
    return %c0_i32, %c0_i32_0 : i32, i32
  }
  func.func @transform_4(%arg0: i32) -> (i32, i32) {
    %c0_i32 = arith.constant 0 : i32
    %c0_i32_0 = arith.constant 0 : i32
    %c0_i32_1 = arith.constant 0 : i32
    return %c0_i32, %c0_i32_0 : i32, i32
  }
  func.func @transform_5(%arg0: i32) -> (i32, i32) {
    %c0_i32 = arith.constant 0 : i32
    %c0_i32_0 = arith.constant 0 : i32
    %c0_i32_1 = arith.constant 0 : i32
    return %c0_i32, %c0_i32_0 : i32, i32
  }
  func.func @transform_6(%arg0: i32) -> (i32, i32, i32) {
    %c0_i32 = arith.constant 0 : i32
    %c0_i32_0 = arith.constant 0 : i32
    %c0_i32_1 = arith.constant 0 : i32
    return %c0_i32, %c0_i32_0, %arg0 : i32, i32, i32
  }
  func.func @transform_7(%arg0: i32) -> (i32, i32) {
    %c0_i32 = arith.constant 0 : i32
    %c0_i32_0 = arith.constant 0 : i32
    return %c0_i32, %arg0 : i32, i32
  }
}

module attributes {stable_mosaic.version = 11 : i64} {
  func.func @_voxel_pool_kernel(%arg0: i32, %arg1: memref<1x1x512xi32, #tpu.memory_space<vmem>>, %arg2: memref<1x16x512xf32, #tpu.memory_space<vmem>>, %arg3: memref<1x16x256xf32, #tpu.memory_space<vmem>>) attributes {dimension_semantics = [#tpu.dimension_semantics<parallel>], iteration_bounds = array<i64: 2>, scalar_prefetch = 0 : i64, scratch_operands = 0 : i64, tpu.core_type = #tpu.core_type<tc>, window_params = [{transform_indices = @transform_0, window_bounds = array<i64: 1, 1, 512>}, {transform_indices = @transform_1, window_bounds = array<i64: 1, 16, 512>}, {transform_indices = @transform_2, window_bounds = array<i64: 1, 16, 256>}]} {
    %c0 = arith.constant 0 : index
    %c0_0 = arith.constant 0 : index
    %c0_1 = arith.constant 0 : index
    %0 = vector.load %arg1[%c0, %c0_0, %c0_1] : memref<1x1x512xi32, #tpu.memory_space<vmem>>, vector<1x1x512xi32>
    %1 = vector.shape_cast %0 : vector<1x1x512xi32> to vector<1x512xi32>
    %c0_2 = arith.constant 0 : index
    %c0_3 = arith.constant 0 : index
    %c0_4 = arith.constant 0 : index
    %2 = vector.load %arg2[%c0_2, %c0_3, %c0_4] : memref<1x16x512xf32, #tpu.memory_space<vmem>>, vector<1x16x512xf32>
    %3 = vector.shape_cast %2 : vector<1x16x512xf32> to vector<16x512xf32>
    %4 = tpu.iota {dimensions = array<i32: 0>} : vector<256x512xi32>
    %5 = vector.broadcast %1 : vector<1x512xi32> to vector<256x512xi32>
    %6 = arith.cmpi eq, %4, %5 : vector<256x512xi32>
    %7 = arith.extui %6 : vector<256x512xi1> to vector<256x512xi32>
    %8 = arith.sitofp %7 : vector<256x512xi32> to vector<256x512xf32>
    %cst = arith.constant dense<0.000000e+00> : vector<16x256xf32>
    %9 = tpu.matmul %3, %8, %cst {dimension_numbers = #tpu.dot_dimension_numbers<[1], [1], [0], [0], [0, 0, 1, 0], [], []>} : vector<16x512xf32>, vector<256x512xf32>, vector<16x256xf32> -> vector<16x256xf32>
    %c0_5 = arith.constant 0 : index
    %c0_6 = arith.constant 0 : index
    %c0_7 = arith.constant 0 : index
    %10 = vector.load %arg3[%c0_5, %c0_6, %c0_7] : memref<1x16x256xf32, #tpu.memory_space<vmem>>, vector<1x16x256xf32>
    %11 = vector.shape_cast %10 : vector<1x16x256xf32> to vector<16x256xf32>
    %12 = vector.shape_cast %9 : vector<16x256xf32> to vector<1x16x256xf32>
    tpu.vector_store %arg3[%c0_5, %c0_6, %c0_7], %12 {strides = array<i32>} : memref<1x16x256xf32, #tpu.memory_space<vmem>>, vector<1x16x256xf32>,
    return
  }
  func.func @transform_0(%arg0: i32) -> (i32, i32, i32) {
    %c0_i32 = arith.constant 0 : i32
    %c0_i32_0 = arith.constant 0 : i32
    %c0_i32_1 = arith.constant 0 : i32
    return %arg0, %c0_i32, %c0_i32_0 : i32, i32, i32
  }
  func.func @transform_1(%arg0: i32) -> (i32, i32, i32) {
    %c0_i32 = arith.constant 0 : i32
    %c0_i32_0 = arith.constant 0 : i32
    %c0_i32_1 = arith.constant 0 : i32
    return %arg0, %c0_i32, %c0_i32_0 : i32, i32, i32
  }
  func.func @transform_2(%arg0: i32) -> (i32, i32, i32) {
    %c0_i32 = arith.constant 0 : i32
    %c0_i32_0 = arith.constant 0 : i32
    %c0_i32_1 = arith.constant 0 : i32
    return %arg0, %c0_i32, %c0_i32_0 : i32, i32, i32
  }
}

</mosaic_0001>

<bundles_post_ra>
// kernel: custom-call.22
= control target key start
LH: loop header
LB: loop body
LE: loop exit
PB: predicated region body
PF: predicated region fallthrough
CT: control target
= control target key end

     0   :  { %s1053_s0 = inlined_call_operand.vmem [shape: f32[2,2,3,3], index: 0, kind: input, shape index: {}]   ;;  %s1054_s1 = inlined_call_operand.vmem [shape: f32[2,2,3,3], index: 1, kind: output, shape index: {0}]   ;;  %s1055_s2 = inlined_call_operand.hbm [shape: s32[2,2,3], index: 2, kind: output, shape index: {1}]   ;;  %s1056_s3 = inlined_call_operand.vmem [shape: s32[2,2,3], index: 3, kind: output, shape index: {2}]  }
   0x1   :  { %1060 = sst [smem:[#allocation13_spill]] %s1053_s0 }
   0x2   :  { %5 = vsyncpa [#allocation6], 0 }
   0x3   :  { %7 = vsyncpa [#allocation6 + $0x1], 0  ;;  %s841_s12 = smov 0   ;;  %s843_s13 = smov 0  }
   0x4   :  { %s845_s14 = smov 0   ;;  %s847_s15 = smov 0  }
   0x5   :  { %s849_s16 = smov 0   ;;  %s851_s17 = smov 0  }
   0x6   :  { %s853_s18 = smov 0   ;;  %s855_s19 = smov 0  }
   0x7 LB: > { %s610_s20 = sadd.s32 4294967295, %s814_s19   ;;  %s611_s21 = sadd.s32 4294967294, %s814_s19   ;;  %s814_s19 = sphi %s855_s19, %s13_s19   ;;  %s810_s18 = sphi %s853_s18, %s1077_s18   ;;  %s806_s17 = sphi %s851_s17, %s1076_s17   ;;  %s802_s16 = sphi %s849_s16, %s1075_s16   ;;  %s798_s15 = sphi %s847_s15, %s1074_s15   ;;  %s794_s14 = sphi %s845_s14, %s1073_s14   ;;  %s790_s13 = sphi %s843_s13, %s1072_s13   ;;  %s786_s12 = sphi %s841_s12, %s1071_s12  }
   0x8   : > { %s22_s22 = sadd.s32 1, %s806_s17  ;;  %s25_s23 = sadd.s32 1, %s810_s18 }
   0x9   : > { %p23_p0 = scmp.ge.s32.totalorder %s22_s22, 2  ;;  %s29_s24 = sshrl.u32 %s806_s17, 3 }
   0xa   : > { %p46_p1 = scmp.ne.s32.totalorder %s794_s14, %s790_s13  ;;  %p47_p2 = scmp.eq.s32.totalorder %s610_s20, 3 }
   0xb   : > { %s1079_s22 = smov (%p23_p0, %s22_s22), 0  ;;  %s1081_s23 = smov (!%p23_p0, %s25_s23), %s810_s18 }
   0xc   : > { %1061 = sst [smem:[#allocation11_spill]] %s1079_s22  ;;  %s30_s25 = sshrl.u32 %s1079_s22, 3 }
   0xd   : > { %p27_p3 = scmp.ge.s32.totalorder %s1081_s23, 2  ;;  %s32_s26 = ssub.s32 %s29_s24, %s30_s25 }
   0xe   : > { %p894_p4 = por %p47_p2, %p46_p1  ;;  %p52_p5 = scmp.ne.s32.totalorder %s790_s13, %s786_s12 }
   0xf   : > { %s1083_s23 = smov (%p27_p3, %s1081_s23), 0  ;;  %p53_p6 = scmp.eq.s32.totalorder %s611_s21, 3 }
  0x10   : > { %1063 = sst [smem:[#allocation12_spill]] %s1083_s23  ;;  %s31_s28 = ssub.s32 %s810_s18, %s1083_s23 }
  0x11   : > { %s36_s29 = sadd.s32 1, %s794_s14  ;;  %s33_s30 = sor.u32 %s32_s26, %s31_s28 }
  0x12   : > { %p905_p7 = por %p53_p6, %p52_p5  ;;  %p34_p8 = scmp.eq.s32.totalorder %s33_s30, 0 }
  0x13   : > { %p613_p9 = scmp.ge.s32.totalorder %s814_s19, 4 }
  0x14   : > { %s910_s5 = scalar_select %p34_p8, %s794_s14, %s36_s29  }
  0x15   : > { %99 = sbr.rel (%p613_p9) target bundleno = 32 (0x20), region = 16  ;;  %s101_s6 = sand.u32 (!%p613_p9), 1, %s814_s19  }
  0x16   : > { %s615_s7 = sshll.u32 (!%p613_p9), %s810_s18, 1  ;;  %s614_s8 = sshll.u32 (!%p613_p9), %s101_s6, 2 }
  0x17   : > { %s105_s9 = sadd.s32 (!%p613_p9), %s806_s17, %s615_s7  ;;  %s1065_s0 = sld [smem:[#allocation13_spill]] (!%p613_p9) }
  0x18   : > { %s616_s10 = sshll.u32 (!%p613_p9), %s105_s9, 2  ;;  %s103_s25 = scalar_lea.vmem (!%p613_p9), [#allocation1], %s614_s8 }
  0x1d   : > { %s107_s24 = scalar_lea.vmem %s1065_s0, %s616_s10 }
  0x1e   : > { %v124_v0 = vld [vmem:[%s107_s24] sm:$0xf] }
  0x1f   : > { %125 = vst [vmem:[%s103_s25] sm:$0xf] %v124_v0 }
  0x20 PF: > { %p617_p10 = scmp.ge.s32.totalorder %s814_s19, 1  ;;  %p142_p11 = scmp.lt.s32.totalorder %s814_s19, 5 }
  0x22   : > { %p143_p12 = pnand %p617_p10, %p142_p11 }
  0x24   : > { %146 = sbr.rel (%p143_p12) target bundleno = 496 (0x1f0), region = 50 }
  0x29   : > { %s153_s26 = sand.u32 1, %s610_s20   ;;  %s1057_s28 = sand.u32 1, %s790_s13   ;;  %v186_v1 = vlaneseq  ;;  %v820_v4 = vmov 0  }
  0x2a   : > { %s618_s29 = sshll.u32 %s153_s26, 2  ;;  %s926_s30 = sshll.u32 %s1057_s28, 1 }
  0x2b   : > { %v929_v2 = vshrl.u32 %v186_v1, 7  ;;  %s155_s6 = scalar_lea.vmem [#allocation1], %s618_s29  ;;  %s181_s7 = sand.u32 7, %s798_s15  }
  0x2c   : > { %v175_v3 = vld [vmem:[%s155_s6] sm:$0xf]  ;;  %s933_s8 = scalar_lea.vmem [#allocation4], %s181_s7  ;;  %s936_s20 = scalar_lea.vmem [#allocation3], %s618_s29 }
  0x2d   : > { %176 = vst [vmem:[#allocation0] sm:$0xf] %v175_v3  ;;  %s166_s9 = scalar_lea.vmem [#allocation5], %s926_s30  ;;  %s940_s11 = scalar_lea.vmem [#allocation7], %s181_s7 }
  0x2e   : > { %190 = vst [vmem:[#allocation9] sm:$0xff] %v929_v2  ;;  %s942_s21 = smov 0  }
  0x2f   : > { %185 = vst [vmem:[%s933_s8] sm:$0x1] %v820_v4 }
  0x34   : > { %v179_v5 = vld [vmem:[#allocation0] sm:$0xff] }
  0x35   : > { %180 = vst [vmem:[#allocation2] sm:$0xff] %v179_v5 }
  0x36 LB: >> { %vm206_vm0 = vcmp.lt.s32.totalorder %v929_v2, 3  ;;  %v949_v8 = vstv %s818_s21  ;;  %s247_s24 = ssub.s32 128, %s818_s21  ;;  %v253_v39 = vand.u32 127, %v186_v1  ;;  %s259_s25 = scalar_lea.vmem [#allocation2], %s818_s21  ;;  %v256_v42 = vld [vmem:[%s933_s8] ss:$0 sm:$0xff]  ;;  %s818_s21 = sphi %s942_s21, %s196_s21  }
  0x37   : >> { %vm205_vm1 = vcmp.ge.s32.totalorder %v929_v2, %v949_v8  ;;  %s265_s6 = scalar_lea.vmem [#allocation9], %s818_s21  ;;  %vm285_vm14 = vcmp.gt.s32.totalorder %v929_v2, %v949_v8  ;;  %s196_s21 = sadd.s32 1, %s818_s21  }
  0x38   : >> { %vm207_vm3 = vmand %vm205_vm1, %vm206_vm0  ;;  %vm254_vm12 = vcmp.eq.s32.totalorder %v253_v39, %v949_v8  ;;  %v267_v44 = vld [vmem:[%s265_s6] ss:$0 sm:$0xff]  ;;  %p193_p13 = scmp.ge.s32.totalorder %s196_s21, 3  }
  0x39   : > { %s436_s28 = sshll.u32 (%p193_p13), %s166_s9, 4  ;;  %s736_s23 = scalar_lea.hbm (%p193_p13), %s1055_s2, 4  ;;  %s437_s28 = int_to_ptr.vmem [resolvable:$true] %s436_s28 }
  0x3c   : >> { %v201_v6 = vld [vmem:[#allocation2] sm:$0xff]  ;;  %v261_v40 = vld [vmem:[%s259_s25] ss:$0 sm:$0xff] }
  0x3d   : >> { %v202_v7 = vand.u32 2147483647, %v201_v6 }
  0x3f   : >> { %vm622_vm2 = vcmp.gt.f32.partialorder %v202_v7, -inf }
  0x40   : >> { %vm209_vm4 = vmand %vm207_vm3, %vm622_vm2 }
  0x41   : >> { %v210_v9 = vsel %vm209_vm4, %v929_v2, %v949_v8  ;;  %v211_v10 = vsel %vm209_vm4, %v202_v7, -inf  ;;  %vm302_vm4 = vmand %vm285_vm14, %vm254_vm12 }
  0x42   : >> { %v212_v11 = vrot.slane %v211_v10, 1  ;;  %v213_v12 = vrot.slane %v210_v9, 1 }
  0x44   : >> { %vm214_vm5 = vcmp.ge.f32.partialorder %v212_v11, %v211_v10  ;;  %v217_v13 = vrot.slane %v212_v11, 1  ;;  %v218_v14 = vrot.slane %v213_v12, 1 }
  0x45   : >> { %v215_v15 = vsel %vm214_vm5, %v212_v11, %v211_v10  ;;  %v216_v16 = vsel %vm214_vm5, %v213_v12, %v210_v9  ;;  %vm277_vm5 = vcmp.gt.s32.totalorder %v253_v39, %v949_v8 }
  0x46   : >> { %vm219_vm6 = vcmp.ge.f32.partialorder %v217_v13, %v215_v15  ;;  %v222_v17 = vrot.slane %v217_v13, 1  ;;  %v223_v18 = vrot.slane %v218_v14, 1 }
  0x47   : >> { %v220_v19 = vsel %vm219_vm6, %v217_v13, %v215_v15  ;;  %v221_v20 = vsel %vm219_vm6, %v218_v14, %v216_v16 }
  0x48   : >> { %vm224_vm7 = vcmp.ge.f32.partialorder %v222_v17, %v220_v19  ;;  %v227_v21 = vrot.slane %v222_v17, 1  ;;  %v228_v22 = vrot.slane %v223_v18, 1 }
  0x49   : >> { %v225_v23 = vsel %vm224_vm7, %v222_v17, %v220_v19  ;;  %v226_v24 = vsel %vm224_vm7, %v223_v18, %v221_v20 }
  0x4a   : >> { %vm229_vm8 = vcmp.ge.f32.partialorder %v227_v21, %v225_v23  ;;  %v232_v25 = vrot.slane %v227_v21, 1  ;;  %v233_v26 = vrot.slane %v228_v22, 1 }
  0x4b   : >> { %v230_v27 = vsel %vm229_vm8, %v227_v21, %v225_v23  ;;  %v231_v28 = vsel %vm229_vm8, %v228_v22, %v226_v24 }
  0x4c   : >> { %vm234_vm9 = vcmp.ge.f32.partialorder %v232_v25, %v230_v27  ;;  %v237_v29 = vrot.slane %v232_v25, 1  ;;  %v238_v30 = vrot.slane %v233_v26, 1 }
  0x4d   : >> { %v235_v31 = vsel %vm234_vm9, %v232_v25, %v230_v27  ;;  %v236_v32 = vsel %vm234_vm9, %v233_v26, %v231_v28 }
  0x4e   : >> { %vm239_vm10 = vcmp.ge.f32.partialorder %v237_v29, %v235_v31  ;;  %v242_v33 = vrot.slane %v237_v29, 1  ;;  %v243_v34 = vrot.slane %v238_v30, 1 }
  0x4f   : >> { %v240_v35 = vsel %vm239_vm10, %v237_v29, %v235_v31  ;;  %v241_v36 = vsel %vm239_vm10, %v238_v30, %v236_v32 }
  0x50   : >> { %vm244_vm11 = vcmp.ge.f32.partialorder %v242_v33, %v240_v35 }
  0x51   : >> { %v246_v37 = vsel %vm244_vm11, %v243_v34, %v241_v36 }
  0x52   : >> { %248 = vrot.lane.b32.xlu0 %v246_v37, %s247_s24  ;;  %s429_s24 = sshrl.u32 (%p193_p13), %s798_s15, 3 }
  0xc4   : >> { %v249_v38 = vpop.permute.xlu0 %248 }
  0xc5   : >> { %632 = vpush %v249_v38 }
  0xf6   : >> { %s633_s26 = spop %632 }
  0xf7   : >> { %v255_v41 = vstv %s633_s26  ;;  %s260_s29 = scalar_lea.vmem [#allocation2], %s633_s26  ;;  %s266_s7 = scalar_lea.vmem [#allocation9], %s633_s26 }
  0xf8   : >> { %v262_v43 = vld [vmem:[%s260_s29] ss:$0 sm:$0xff]  ;;  %v257_v46 = vsel %vm254_vm12, %v255_v41, %v256_v42  ;;  %s626_s26 = sshll.u32 (%p193_p13), %s802_s16, 1 }
  0xf9   : >> { %v268_v45 = vld [vmem:[%s266_s7] ss:$0 sm:$0xff]  ;;  %263 = vst [vmem:[%s260_s29] sm:$0x1] %v261_v40  ;;  %vm271_vm13 = vcmp.ne.f32.partialorder %v262_v43, 0.0  ;;  %v278_v62 = vsel %vm277_vm5, %v262_v43, 0.0  ;;  %s390_s21 = sadd.s32 (%p193_p13), %s798_s15, %s626_s26  ;;  %s1066_s15 = sand.u32 (%p193_p13), 1, %s790_s13  }
  0xfa   : >> { %264 = vst [vmem:[%s259_s25] sm:$0x1] %v262_v43  ;;  %vm272_vm15 = vmand %vm254_vm12, %vm271_vm13  ;;  %s982_s25 = sadd.s32 (%p193_p13), %s802_s16, %s429_s24  ;;  %s627_s10 = sshll.u32 (%p193_p13), %s390_s21, 2 }
  0xfb   : >> { %269 = vst [vmem:[%s266_s7] sm:$0x1] %v267_v44  ;;  %v273_v47 = vsel %vm272_vm15, %v262_v43, 1.0  ;;  %s628_s29 = sshll.u32 (%p193_p13), %s982_s25, 1  ;;  %s392_s22 = scalar_lea.vmem (%p193_p13), %s1054_s1, %s627_s10 }
  0xfc   : >> { %270 = vst [vmem:[%s265_s6] sm:$0x1] %v268_v45  ;;  %v286_v48 = vsel %vm285_vm14, %v273_v47, 1.0  ;;  %s434_s7 = scalar_lea.hbm (%p193_p13), %s1055_s2, %s628_s29  ;;  %s381_s16 = scalar_lea.sflag (%p193_p13), [#allocation6], %s1066_s15 }
  0xfd   : >> { %714 = vrcp.f32 %v286_v48  ;;  %258 = vst [vmem:[%s933_s8] sm:$0x1] %v257_v46  ;;  %v298_v52 = vand.u32 2147483648, %v286_v48  ;;  %v296_v54 = vand.u32 2147483647, %v286_v48  ;;  %vm292_vm1 = vweird.f32 %v286_v48  ;;  %s438_s0 = sshll.u32 (%p193_p13), %s434_s7, 4  ;;  %s439_s0 = int_to_ptr.hbm [resolvable:$true] %s438_s0 }
  0xfe   : > { %s730_s26 = sshra.s32 (%p193_p13), %s439_s0, 4  ;;  %s731_s26 = int_to_ptr.hbm [resolvable:$true] %s730_s26 }
  0xff   : >> { %v299_v56 = vor.u32 1.1754944e-38, %v298_v52  ;;  %vm297_vm3 = vcmp.eq.f32.partialorder %v296_v54, 8.507059e+37  ;;  %s732_s8 = scalar_lea.hbm (%p193_p13), %s731_s26, 2  ;;  %p737_p3 = scmp.lt.s32.totalorder (%p193_p13), %s731_s26, %s1055_s2 }
 0x100   : > { %p733_p0 = scmp.ne.s32.totalorder (%p193_p13), %s731_s26, %s732_s8  ;;  %p738_p5 = scmp.lt.s32.totalorder (%p193_p13), %s736_s23, %s732_s8 }
 0x101   : >> { %v282_v58 = vld [vmem:[#allocation2] sm:$0xff] }
 0x102   : > { %p734_p1 = pnand (%p193_p13), %p733_p0, %p894_p4  ;;  %p739_p6 = por (%p193_p13), %p738_p5, %p737_p3 }
 0x103   : >> { %v715_v49 = vpop.eup %714  ;;  %v309_v4 = vld [vmem:[#allocation9] sm:$0xff] (%p193_p13) }
 0x104   : >> { %v288_v50 = vmul.f32 %v715_v49, %v286_v48  ;;  %vm293_vm0 = vweird.f32 %v715_v49  ;;  %v366_v1 = vld [vmem:[#allocation4] sm:$0x3] (%p193_p13)  ;;  %p735_p2 = pneg (%p193_p13), %p734_p1 }
 0x105   : >> { %vm294_vm2 = vmor %vm292_vm1, %vm293_vm0  ;;  %369 = vst [vmem:[%s166_s9] sm:$0x3] (%p193_p13), %v366_v1 }
 0x106   : >> { %v289_v51 = vsub.f32 1.0, %v288_v50  ;;  %p740_p8 = pnand (%p193_p13), %p739_p6, %p735_p2 }
 0x108   : >> { %v290_v53 = vmul.f32 %v715_v49, %v289_v51 }
 0x10a   : >> { %v291_v55 = vadd.f32 %v715_v49, %v290_v53 }
 0x10c   : >> { %v295_v57 = vsel %vm294_vm2, %v715_v49, %v291_v55 }
 0x10d   : >> { %v300_v59 = vsel %vm297_vm3, %v299_v56, %v295_v57 }
 0x10e   : >> { %v301_v60 = vmul.f32 %v300_v59, %v282_v58 }
 0x110   : >> { %v303_v61 = vsel %vm302_vm4, %v301_v60, 0.0 }
 0x111   : >> { %304 = vadd.xlane.f32.xlu0 %v303_v61 }
 0x13a   : > { %325 = vxpose.xlu0.b32.start.end [1/1] (short) (narrow) (%p193_p13), %v309_v4, 8 }
 0x184   : >> { %v305_v63 = vpop.xlane.xlu0 %304 }
 0x185   : >> { %v306_v0 = vmul.f32 %v305_v63, %v278_v62  ;;  %195 = sbr.rel (!%p193_p13) target bundleno = 54 (0x36), region = 202 }
 0x187   : >> { %v307_v3 = vsub.f32 %v301_v60, %v306_v0 }
 0x189   : >> { %308 = vst [vmem:[#allocation2] sm:$0xff] %v307_v3 }
 0x190   : > { %v360_v5 = vld [vmem:[#allocation2] sm:$0xf] }
 0x191   : > { %363 = vst [vmem:[%s936_s20] sm:$0xf] %v360_v5 }
 0x198   : > { %v409_v2 = vld [vmem:[%s936_s20] sm:$0xf] }
 0x199   : > { %410 = vst [vmem:[%s392_s22] sm:$0xf] %v409_v2 }
 0x19a   : > { %743 = shalt.err (!%p740_p8)
}
 0x19b   : > { %634 = dma.vmem_to_hbm [thread:$0]  (%p894_p4), %s437_s28, 32, %s439_s0, %s381_s16  }
 0x19c   : > { %s1067_s22 = scalar_lea.vmem [#allocation8], %s926_s30  ;;  %s448_s24 = scalar_lea.vmem (%p894_p4), %s1056_s3, %s628_s29 }
 0x19d   : > { %s1068_s15 = scalar_lea.vmem (%p894_p4), [#allocation8], %s926_s30 }
 0x1de   : > { %v341_v6 = vpop.trf.xlu0 }
 0x1df   : > { %357 = vst [vmem:[%s940_s11] sm:$0x1] %v341_v6 }
 0x1e3   : > { %444 = sbr.rel (!%p894_p4) target bundleno = 496 (0x1f0), region = 96 }
 0x1e6   : > { %v372_v7 = vld [vmem:[#allocation7] sm:$0x3] }
 0x1e7   : > { %375 = vst [vmem:[%s1067_s22] sm:$0x3] %v372_v7 }
 0x1ee   : > { %v465_v8 = vld [vmem:[%s1068_s15] sm:$0x3] }
 0x1ef   : > { %466 = vst [vmem:[%s448_s24] sm:$0x3] %v465_v8 }
 0x1f0 PF: > { %p640_p9 = scmp.ge.s32.totalorder %s814_s19, 2  ;;  %s494_s0 = sand.u32 1, %s786_s12  }
 0x1f1   : > { %s495_s27 = scalar_lea.sflag [#allocation6], %s494_s0 }
 0x1f2   : > { %p637_p10 = pnand %p640_p9, %p905_p7 }
 0x1f4   : > { %p638_p4 = pneg %p637_p10 }
 0x1f6   : > { %781 = dma.done.wait (%p638_p4), %s495_s27, 32  }
 0x1f7   : > { %783 = vsyncadd (%p638_p4), %s495_s27, 4294967264  ;;  %s13_s19 = sadd.s32 1, %s814_s19   ;;  %s1069_s28 = sld [smem:[#allocation11_spill]] }
 0x1f8   : > { %p10_p11 = scmp.ge.s32.totalorder %s13_s19, 6   ;;  %s1070_s30 = sld [smem:[#allocation12_spill]] }
 0x1f9   : > { %s1071_s12 = smov %s790_s13  ;;  %s1072_s13 = smov %s794_s14 }
 0x1fa   : > { %s1073_s14 = smov %s910_s5  ;;  %s1074_s15 = smov %s806_s17 }
 0x1fb   : > { %s1075_s16 = smov %s810_s18  ;;  %12 = sbr.rel (!%p10_p11) target bundleno = 7 (0x7), region = 213 }
 0x1fd   : > { %s1076_s17 = smov %s1069_s28 }
 0x1fe   : > { %s1077_s18 = smov %s1070_s30 }
 0x200   :  { %508 = vsyncpa [#allocation6], 1 }
 0x201   :  { %510 = vsyncpa [#allocation6 + $0x1], 1 }

// kernel: custom-call.24
= control target key start
LH: loop header
LB: loop body
LE: loop exit
PB: predicated region body
PF: predicated region fallthrough
CT: control target
= control target key end

     0   :  { %s428_s6 = smov 0   ;;  %s430_s7 = smov 0   ;;  %s499_s0 = inlined_call_operand.vmem [shape: f32[2,2,1,3,3], index: 0, kind: input, shape index: {}]   ;;  %s500_s1 = inlined_call_operand.vmem [shape: f32[2,2,1,3,3], index: 1, kind: output, shape index: {}]  }
   0x1   :  { %s432_s8 = smov 0   ;;  %s434_s9 = smov 0  }
   0x2   :  { %s436_s10 = smov 0  }
   0x3 LB: > { %s320_s11 = sadd.s32 4294967295, %s415_s10   ;;  %s36_s12 = sadd.s32 1, %s407_s8  ;;  %s415_s10 = sphi %s436_s10, %s7_s10   ;;  %s411_s9 = sphi %s434_s9, %s504_s9   ;;  %s407_s8 = sphi %s432_s8, %s503_s8   ;;  %s403_s7 = sphi %s430_s7, %s502_s7   ;;  %s399_s6 = sphi %s428_s6, %s501_s6  }
   0x4   : > { %p38_p0 = scmp.ge.s32.totalorder %s36_s12, 2  ;;  %s40_s13 = sadd.s32 1, %s411_s9 }
   0x5   : > { %p322_p2 = scmp.ge.s32.totalorder %s415_s10, 4 }
   0x6   : > { %s506_s12 = smov (%p38_p0, %s36_s12), 0  ;;  %s508_s13 = smov (!%p38_p0, %s40_s13), %s411_s9 }
   0x7   : > { %p42_p1 = scmp.ge.s32.totalorder %s508_s13, 2  ;;  %54 = sbr.rel (%p322_p2) target bundleno = 15 (0xf), region = 16 }
   0x8   : > { %s56_s14 = sand.u32 (!%p322_p2), 1, %s415_s10   ;;  %s324_s15 = sshll.u32 (!%p322_p2), %s411_s9, 1 }
   0x9   : > { %s510_s13 = smov (%p42_p1, %s508_s13), 0  ;;  %s323_s16 = sshll.u32 (!%p322_p2), %s56_s14, 2 }
   0xa   : > { %s63_s17 = sadd.s32 (!%p322_p2), %s407_s8, %s324_s15  ;;  %s58_s22 = scalar_lea.vmem (!%p322_p2), [#allocation1], %s323_s16 }
   0xb   : > { %s325_s18 = sshll.u32 (!%p322_p2), %s63_s17, 2 }
   0xc   : > { %s65_s21 = scalar_lea.vmem %s499_s0, %s325_s18 }
   0xd   : > { %v82_v0 = vld [vmem:[%s65_s21] sm:$0xf] }
   0xe   : > { %83 = vst [vmem:[%s58_s22] sm:$0xf] %v82_v0 }
   0xf PF: > { %p326_p3 = scmp.ge.s32.totalorder %s415_s10, 1  ;;  %p100_p4 = scmp.lt.s32.totalorder %s415_s10, 5 }
  0x11   : > { %p101_p5 = pnand %p326_p3, %p100_p4 }
  0x13   : > { %104 = sbr.rel (%p101_p5) target bundleno = 440 (0x1b8), region = 50 }
  0x18   : > { %s470_s23 = sand.u32 1, %s320_s11   ;;  %v122_v1 = vlaneseq  ;;  %v417_v20 = vmov -1.0   ;;  %s330_s26 = sshll.u32 %s403_s7, 1 }
  0x19   : > { %s327_s24 = sshll.u32 %s470_s23, 2  ;;  %s215_s27 = sadd.s32 %s399_s6, %s330_s26 }
  0x1a   : > { %s113_s25 = scalar_lea.vmem [#allocation1], %s327_s24  ;;  %v123_v3 = vand.u32 127, %v122_v1  ;;  %v126_v4 = vshrl.u32 %v122_v1, 7  ;;  %s117_s28 = scalar_lea.vmem [#allocation3], %s327_s24 }
  0x1b   : > { %v120_v2 = vld [vmem:[%s113_s25] sm:$0xf]  ;;  %s331_s29 = sshll.u32 %s215_s27, 2 }
  0x1c   : > { %121 = vst [vmem:[#allocation0] sm:$0xf] %v120_v2  ;;  %vm128_vm0 = vcmp.eq.s32.totalorder %v126_v4, %v123_v3  ;;  %vm124_vm1 = vcmp.lt.s32.totalorder %v123_v3, 3  ;;  %vm133_vm2 = vcmp.ge.s32.totalorder %v126_v4, %v123_v3  ;;  %vm160_vm8 = vcmp.eq.s32.totalorder %v123_v3, 0  ;;  %s217_s3 = scalar_lea.vmem %s500_s1, %s331_s29 }
  0x1d   : > { %vm134_vm3 = vmand %vm133_vm2, %vm124_vm1  ;;  %vm157_vm9 = vcmp.eq.s32.totalorder %v123_v3, %v126_v4  ;;  %v161_v21 = vsel %vm160_vm8, 1.0, %v417_v20  ;;  %vm168_vm10 = vcmp.eq.s32.totalorder %v123_v3, 1  ;;  %vm178_vm11 = vcmp.eq.s32.totalorder %v123_v3, 2 }
  0x1e   : > { %v162_v22 = vsel %vm157_vm9, %v161_v21, 0.0 }
  0x23   : > { %v129_v5 = vld [vmem:[#allocation0] sm:$0xff] }
  0x24   : > { %v130_v6 = vsel %vm128_vm0, %v129_v5, 0.0  ;;  %v135_v15 = vsel %vm134_vm3, %v129_v5, 0.0 }
  0x25   : > { %131 = vadd.xlane.f32.xlu0 %v130_v6 }
  0x98   : > { %v132_v7 = vpop.xlane.xlu0 %131 }
  0x99   : > { %375 = vrcp.f32 %v132_v7  ;;  %v147_v11 = vand.u32 2147483648, %v132_v7  ;;  %v145_v13 = vand.u32 2147483647, %v132_v7  ;;  %vm141_vm5 = vweird.f32 %v132_v7 }
  0x9b   : > { %v148_v16 = vor.u32 1.1754944e-38, %v147_v11  ;;  %vm146_vm7 = vcmp.eq.f32.partialorder %v145_v13, 8.507059e+37 }
  0x9f   : > { %v376_v8 = vpop.eup %375 }
  0xa0   : > { %v137_v9 = vmul.f32 %v376_v8, %v132_v7  ;;  %vm142_vm4 = vweird.f32 %v376_v8 }
  0xa1   : > { %vm143_vm6 = vmor %vm141_vm5, %vm142_vm4 }
  0xa2   : > { %v138_v10 = vsub.f32 1.0, %v137_v9 }
  0xa4   : > { %v139_v12 = vmul.f32 %v376_v8, %v138_v10 }
  0xa6   : > { %v140_v14 = vadd.f32 %v376_v8, %v139_v12 }
  0xa8   : > { %v144_v17 = vsel %vm143_vm6, %v376_v8, %v140_v14 }
  0xa9   : > { %v149_v18 = vsel %vm146_vm7, %v148_v16, %v144_v17 }
  0xaa   : > { %v150_v19 = vmul.f32 %v149_v18, %v135_v15 }
  0xac   : > { %151 = vst [vmem:[#allocation4] sm:$0xff] %v150_v19 }
  0xb3   : > { %v164_v23 = vld [vmem:[#allocation4 + $0x1] ss:$0 sm:$0xff]  ;;  %v174_v26 = vld [vmem:[#allocation4 + $0x2] ss:$0 sm:$0xff] }
  0xb4   : > { %v165_v24 = vxor.u32 2147483648, %v164_v23  ;;  %v175_v28 = vxor.u32 2147483648, %v174_v26 }
  0xb6   : > { %v169_v25 = vmul.f32 %v165_v24, %v162_v22 }
  0xb8   : > { %170 = vadd.xlane.f32.xlu0 %v169_v25 }
 0x12b   : > { %v171_v27 = vpop.xlane.xlu0 %170 }
 0x12c   : > { %v172_v29 = vsel %vm168_vm10, %v171_v27, %v162_v22 }
 0x12d   : > { %v179_v30 = vmul.f32 %v175_v28, %v172_v29 }
 0x12f   : > { %180 = vadd.xlane.f32.xlu1 %v179_v30 }
 0x1a2   : > { %v181_v31 = vpop.xlane.xlu1 %180 }
 0x1a3   : > { %v182_v32 = vsel %vm178_vm11, %v181_v31, %v172_v29 }
 0x1a4   : > { %v197_v33 = vmul.f32 %v182_v32, %v149_v18 }
 0x1a6   : > { %v199_v34 = vsel %vm141_vm5, %v182_v32, %v197_v33 }
 0x1a7   : > { %200 = vst [vmem:[#allocation2] sm:$0xff] %v199_v34 }
 0x1ae   : > { %v203_v35 = vld [vmem:[#allocation2] sm:$0xf] }
 0x1af   : > { %206 = vst [vmem:[%s117_s28] sm:$0xf] %v203_v35 }
 0x1b6   : > { %v234_v36 = vld [vmem:[%s117_s28] sm:$0xf] }
 0x1b7   : > { %235 = vst [vmem:[%s217_s3] sm:$0xf] %v234_v36 }
 0x1b8 PF: > { %s7_s10 = sadd.s32 1, %s415_s10   ;;  %s501_s6 = smov %s407_s8 }
 0x1b9   : > { %p4_p6 = scmp.ge.s32.totalorder %s7_s10, 6   ;;  %s502_s7 = smov %s411_s9 }
 0x1ba   : > { %s503_s8 = smov %s506_s12  ;;  %s504_s9 = smov %s510_s13 }
 0x1bb   :  { %6 = sbr.rel (!%p4_p6) target bundleno = 3 (0x3), region = 112 }

// kernel: custom-call.23
= control target key start
LH: loop header
LB: loop body
LE: loop exit
PB: predicated region body
PF: predicated region fallthrough
CT: control target
= control target key end

     0   :  { %s427_s6 = smov 0   ;;  %s429_s7 = smov 0   ;;  %s498_s0 = inlined_call_operand.vmem [shape: f32[2,2,1,3,3], index: 0, kind: input, shape index: {}]   ;;  %s499_s1 = inlined_call_operand.vmem [shape: f32[2,2,1,3,3], index: 1, kind: output, shape index: {}]  }
   0x1   :  { %s431_s8 = smov 0   ;;  %s433_s9 = smov 0  }
   0x2   :  { %s435_s10 = smov 0  }
   0x3 LB: > { %s319_s11 = sadd.s32 4294967295, %s414_s10   ;;  %s36_s12 = sadd.s32 1, %s406_s8  ;;  %s414_s10 = sphi %s435_s10, %s7_s10   ;;  %s410_s9 = sphi %s433_s9, %s503_s9   ;;  %s406_s8 = sphi %s431_s8, %s502_s8   ;;  %s402_s7 = sphi %s429_s7, %s501_s7   ;;  %s398_s6 = sphi %s427_s6, %s500_s6  }
   0x4   : > { %p38_p0 = scmp.ge.s32.totalorder %s36_s12, 2  ;;  %s40_s13 = sadd.s32 1, %s410_s9 }
   0x5   : > { %p321_p2 = scmp.ge.s32.totalorder %s414_s10, 4 }
   0x6   : > { %s505_s12 = smov (%p38_p0, %s36_s12), 0  ;;  %s507_s13 = smov (!%p38_p0, %s40_s13), %s410_s9 }
   0x7   : > { %p42_p1 = scmp.ge.s32.totalorder %s507_s13, 2  ;;  %54 = sbr.rel (%p321_p2) target bundleno = 15 (0xf), region = 16 }
   0x8   : > { %s56_s14 = sand.u32 (!%p321_p2), 1, %s414_s10   ;;  %s323_s15 = sshll.u32 (!%p321_p2), %s410_s9, 1 }
   0x9   : > { %s509_s13 = smov (%p42_p1, %s507_s13), 0  ;;  %s322_s16 = sshll.u32 (!%p321_p2), %s56_s14, 2 }
   0xa   : > { %s63_s17 = sadd.s32 (!%p321_p2), %s406_s8, %s323_s15  ;;  %s58_s22 = scalar_lea.vmem (!%p321_p2), [#allocation1], %s322_s16 }
   0xb   : > { %s324_s18 = sshll.u32 (!%p321_p2), %s63_s17, 2 }
   0xc   : > { %s65_s21 = scalar_lea.vmem %s498_s0, %s324_s18 }
   0xd   : > { %v82_v0 = vld [vmem:[%s65_s21] sm:$0xf] }
   0xe   : > { %83 = vst [vmem:[%s58_s22] sm:$0xf] %v82_v0 }
   0xf PF: > { %p325_p3 = scmp.ge.s32.totalorder %s414_s10, 1  ;;  %p100_p4 = scmp.lt.s32.totalorder %s414_s10, 5 }
  0x11   : > { %p101_p5 = pnand %p325_p3, %p100_p4 }
  0x13   : > { %104 = sbr.rel (%p101_p5) target bundleno = 440 (0x1b8), region = 50 }
  0x18   : > { %s469_s23 = sand.u32 1, %s319_s11   ;;  %v122_v1 = vlaneseq  ;;  %v416_v20 = vmov -1.0   ;;  %s329_s26 = sshll.u32 %s402_s7, 1 }
  0x19   : > { %s326_s24 = sshll.u32 %s469_s23, 2  ;;  %s214_s27 = sadd.s32 %s398_s6, %s329_s26 }
  0x1a   : > { %s113_s25 = scalar_lea.vmem [#allocation1], %s326_s24  ;;  %v123_v3 = vand.u32 127, %v122_v1  ;;  %v126_v4 = vshrl.u32 %v122_v1, 7  ;;  %s117_s28 = scalar_lea.vmem [#allocation3], %s326_s24 }
  0x1b   : > { %v120_v2 = vld [vmem:[%s113_s25] sm:$0xf]  ;;  %s330_s29 = sshll.u32 %s214_s27, 2 }
  0x1c   : > { %121 = vst [vmem:[#allocation0] sm:$0xf] %v120_v2  ;;  %vm128_vm0 = vcmp.eq.s32.totalorder %v126_v4, %v123_v3  ;;  %vm124_vm1 = vcmp.lt.s32.totalorder %v123_v3, 3  ;;  %vm133_vm2 = vcmp.le.s32.totalorder %v126_v4, %v123_v3  ;;  %vm160_vm8 = vcmp.eq.s32.totalorder %v123_v3, 2  ;;  %s216_s3 = scalar_lea.vmem %s499_s1, %s330_s29 }
  0x1d   : > { %vm134_vm3 = vmand %vm133_vm2, %vm124_vm1  ;;  %vm157_vm9 = vcmp.eq.s32.totalorder %v123_v3, %v126_v4  ;;  %v161_v21 = vsel %vm160_vm8, 1.0, %v416_v20  ;;  %vm168_vm10 = vcmp.eq.s32.totalorder %v123_v3, 1  ;;  %vm177_vm11 = vcmp.eq.s32.totalorder %v123_v3, 0 }
  0x1e   : > { %v162_v22 = vsel %vm157_vm9, %v161_v21, 0.0 }
  0x23   : > { %v129_v5 = vld [vmem:[#allocation0] sm:$0xff] }
  0x24   : > { %v130_v6 = vsel %vm128_vm0, %v129_v5, 0.0  ;;  %v135_v15 = vsel %vm134_vm3, %v129_v5, 0.0 }
  0x25   : > { %131 = vadd.xlane.f32.xlu0 %v130_v6 }
  0x98   : > { %v132_v7 = vpop.xlane.xlu0 %131 }
  0x99   : > { %374 = vrcp.f32 %v132_v7  ;;  %v147_v11 = vand.u32 2147483648, %v132_v7  ;;  %v145_v13 = vand.u32 2147483647, %v132_v7  ;;  %vm141_vm5 = vweird.f32 %v132_v7 }
  0x9b   : > { %v148_v16 = vor.u32 1.1754944e-38, %v147_v11  ;;  %vm146_vm7 = vcmp.eq.f32.partialorder %v145_v13, 8.507059e+37 }
  0x9f   : > { %v375_v8 = vpop.eup %374 }
  0xa0   : > { %v137_v9 = vmul.f32 %v375_v8, %v132_v7  ;;  %vm142_vm4 = vweird.f32 %v375_v8 }
  0xa1   : > { %vm143_vm6 = vmor %vm141_vm5, %vm142_vm4 }
  0xa2   : > { %v138_v10 = vsub.f32 1.0, %v137_v9 }
  0xa4   : > { %v139_v12 = vmul.f32 %v375_v8, %v138_v10 }
  0xa6   : > { %v140_v14 = vadd.f32 %v375_v8, %v139_v12 }
  0xa8   : > { %v144_v17 = vsel %vm143_vm6, %v375_v8, %v140_v14 }
  0xa9   : > { %v149_v18 = vsel %vm146_vm7, %v148_v16, %v144_v17 }
  0xaa   : > { %v150_v19 = vmul.f32 %v149_v18, %v135_v15 }
  0xac   : > { %151 = vst [vmem:[#allocation4] sm:$0xff] %v150_v19 }
  0xb3   : > { %v164_v23 = vld [vmem:[#allocation4 + $0x1] ss:$0 sm:$0xff]  ;;  %v173_v26 = vld [vmem:[#allocation4] ss:$0 sm:$0xff] }
  0xb4   : > { %v165_v24 = vxor.u32 2147483648, %v164_v23  ;;  %v174_v28 = vxor.u32 2147483648, %v173_v26 }
  0xb6   : > { %v169_v25 = vmul.f32 %v165_v24, %v162_v22 }
  0xb8   : > { %170 = vadd.xlane.f32.xlu0 %v169_v25 }
 0x12b   : > { %v171_v27 = vpop.xlane.xlu0 %170 }
 0x12c   : > { %v172_v29 = vsel %vm168_vm10, %v171_v27, %v162_v22 }
 0x12d   : > { %v178_v30 = vmul.f32 %v174_v28, %v172_v29 }
 0x12f   : > { %179 = vadd.xlane.f32.xlu1 %v178_v30 }
 0x1a2   : > { %v180_v31 = vpop.xlane.xlu1 %179 }
 0x1a3   : > { %v181_v32 = vsel %vm177_vm11, %v180_v31, %v172_v29 }
 0x1a4   : > { %v196_v33 = vmul.f32 %v181_v32, %v149_v18 }
 0x1a6   : > { %v198_v34 = vsel %vm141_vm5, %v181_v32, %v196_v33 }
 0x1a7   : > { %199 = vst [vmem:[#allocation2] sm:$0xff] %v198_v34 }
 0x1ae   : > { %v202_v35 = vld [vmem:[#allocation2] sm:$0xf] }
 0x1af   : > { %205 = vst [vmem:[%s117_s28] sm:$0xf] %v202_v35 }
 0x1b6   : > { %v233_v36 = vld [vmem:[%s117_s28] sm:$0xf] }
 0x1b7   : > { %234 = vst [vmem:[%s216_s3] sm:$0xf] %v233_v36 }
 0x1b8 PF: > { %s7_s10 = sadd.s32 1, %s414_s10   ;;  %s500_s6 = smov %s406_s8 }
 0x1b9   : > { %p4_p6 = scmp.ge.s32.totalorder %s7_s10, 6   ;;  %s501_s7 = smov %s410_s9 }
 0x1ba   : > { %s502_s8 = smov %s505_s12  ;;  %s503_s9 = smov %s509_s13 }
 0x1bb   :  { %6 = sbr.rel (!%p4_p6) target bundleno = 3 (0x3), region = 111 }

// kernel: lss_bevdepth_forward.2
= control target key start
LH: loop header
LB: loop body
LE: loop exit
PB: predicated region body
PF: predicated region fallthrough
CT: control target
= control target key end

     0   :  { %s902_s24 = smov 0   ;;  %s904_s25 = smov 0   ;;  %s1037_s0 = inlined_call_operand.vmem [shape: f32[32,256], index: 0, kind: input, shape index: {}]   ;;  %s1038_s1 = inlined_call_operand.vmem [shape: f32[32,256], index: 1, kind: input, shape index: {}]   ;;  %s1039_s2 = inlined_call_operand.vmem [shape: f32[48,32], index: 2, kind: input, shape index: {}]   ;;  %s1040_s3 = inlined_call_operand.vmem [shape: f32[48,1], index: 3, kind: input, shape index: {}]   ;;  %s1041_s4 = inlined_call_operand.vmem [shape: f32[4,32], index: 4, kind: input, shape index: {}]   ;;  %s1042_s5 = inlined_call_operand.vmem [shape: f32[4,1], index: 5, kind: input, shape index: {}]   ;;  %s1043_s6 = inlined_call_operand.vmem [shape: f32[4,16,256], index: 6, kind: output, shape index: {0}]   ;;  %s1044_s7 = inlined_call_operand.vmem [shape: f32[4,256], index: 7, kind: output, shape index: {1}]  }
   0x1   :  { %s906_s26 = smov 0  }
   0x2 LB: > { %s918_s27 = sadd.s32 4294967295, %s859_s26   ;;  %s921_s28 = sadd.s32 1, %s859_s26   ;;  %s859_s26 = sphi %s906_s26, %s1049_s26   ;;  %s855_s25 = sphi %s904_s25, %s1048_s25   ;;  %s851_s24 = sphi %s902_s24, %s1047_s24  }
   0x3   : > { %s22_s29 = ssub.s32 %s859_s26, %s921_s28  ;;  %s25_s30 = sadd.s32 1, %s855_s25 }
   0x4   : > { %p23_p0 = scmp.eq.s32.totalorder %s22_s29, 0  ;;  %p32_p1 = scmp.ne.s32.totalorder %s855_s25, %s851_s24 }
   0x5   : > { %p33_p2 = scmp.eq.s32.totalorder %s859_s26, 0  ;;  %p172_p3 = scmp.eq.s32.totalorder %s918_s27, 1 }
   0x6   : > { %s931_s8 = scalar_select %p23_p0, %s855_s25, %s25_s30  }
   0x7   : > { %p933_p4 = por %p33_p2, %p32_p1  ;;  %p937_p5 = por %p172_p3, %p32_p1 }
   0x8   : > { %p776_p6 = scmp.ge.s32.totalorder %s859_s26, 2 }
   0xa   : > { %232 = sbr.rel (%p776_p6) target bundleno = 31 (0x1f), region = 32 }
   0xf   : > { %235 = sbr.rel (!%p933_p4) target bundleno = 23 (0x17), region = 36  ;;  %s237_s11 = sand.u32 (%p933_p4), 1, %s855_s25  }
  0x10   : > { %s778_s12 = sshll.u32 (%p933_p4), %s859_s26, 3  ;;  %s777_s13 = sshll.u32 (%p933_p4), %s237_s11, 5 }
  0x11   : > { %s241_s16 = scalar_lea.vmem (%p933_p4), %s1037_s0, %s778_s12  ;;  %s239_s17 = scalar_lea.vmem (%p933_p4), [#allocation2], %s777_s13 }
  0x12   : > { %v276_v0 = vld [vmem:[%s241_s16] sm:$0xff] (%p933_p4)  ;;  %v278_v1 = vld [vmem:[%s241_s16 + $0x10] sm:$0xff] (%p933_p4) }
  0x13   : > { %v280_v2 = vld [vmem:[%s241_s16 + $0x20] sm:$0xff] (%p933_p4)  ;;  %277 = vst [vmem:[%s239_s17] sm:$0xff] (%p933_p4), %v276_v0  ;;  %v282_v3 = vld [vmem:[%s241_s16 + $0x30] sm:$0xff] (%p933_p4) }
  0x14   : > { %279 = vst [vmem:[%s239_s17 + $0x8] sm:$0xff] %v278_v1 }
  0x15   : > { %281 = vst [vmem:[%s239_s17 + $0x10] sm:$0xff] %v280_v2 }
  0x16   : > { %283 = vst [vmem:[%s239_s17 + $0x18] sm:$0xff] %v282_v3 }
  0x17 PF: > { %289 = sbr.rel (!%p933_p4) target bundleno = 31 (0x1f), region = 74  ;;  %s291_s18 = sand.u32 (%p933_p4), 1, %s855_s25  }
  0x18   : > { %s780_s19 = sshll.u32 (%p933_p4), %s859_s26, 3  ;;  %s779_s20 = sshll.u32 (%p933_p4), %s291_s18, 5 }
  0x19   : > { %s295_s23 = scalar_lea.vmem (%p933_p4), %s1038_s1, %s780_s19  ;;  %s293_s29 = scalar_lea.vmem (%p933_p4), [#allocation3], %s779_s20 }
  0x1a   : > { %v330_v4 = vld [vmem:[%s295_s23] sm:$0xff] (%p933_p4)  ;;  %v332_v5 = vld [vmem:[%s295_s23 + $0x10] sm:$0xff] (%p933_p4) }
  0x1b   : > { %v334_v6 = vld [vmem:[%s295_s23 + $0x20] sm:$0xff] (%p933_p4)  ;;  %331 = vst [vmem:[%s293_s29] sm:$0xff] (%p933_p4), %v330_v4  ;;  %v336_v7 = vld [vmem:[%s295_s23 + $0x30] sm:$0xff] (%p933_p4) }
  0x1c   : > { %333 = vst [vmem:[%s293_s29 + $0x8] sm:$0xff] %v332_v5 }
  0x1d   : > { %335 = vst [vmem:[%s293_s29 + $0x10] sm:$0xff] %v334_v6 }
  0x1e   : > { %337 = vst [vmem:[%s293_s29 + $0x18] sm:$0xff] %v336_v7 }
  0x1f PF: > { %p781_p7 = scmp.ge.s32.totalorder %s859_s26, 1  ;;  %p342_p8 = scmp.lt.s32.totalorder %s859_s26, 3 }
  0x21   : > { %p343_p9 = pnand %p781_p7, %p342_p8 }
  0x22   : > { %s349_s30 = sand.u32 (!%p343_p9), 1, %s851_s24   ;;  %p394_p10 = scmp.lt.s32.totalorder (!%p343_p9), %s918_s27, 1 }
  0x23   : > { %346 = sbr.rel (%p343_p9) target bundleno = 407 (0x197), region = 112  ;;  %s961_s9 = sshll.u32 (!%p343_p9), %s349_s30, 5 }
  0x24   : > { %s351_s26 = scalar_lea.vmem (!%p343_p9), [#allocation2], %s961_s9  ;;  %s358_s22 = scalar_lea.vmem (!%p343_p9), [#allocation3], %s961_s9 }
  0x28   : > { %v861_v8 = vmov 0   ;;  %v413_v9 = vld [vmem:[%s1040_s3 + $0x28] sm:$0xff]  ;;  %v411_v10 = vld [vmem:[%s1040_s3 + $0x18] sm:$0xff]  ;;  %v400_v12 = vld [vmem:[%s351_s26 + $0x10] sm:$0xff]  ;;  %vm444_vm0 = vcmask 261120   ;;  %s395_s29 = scalar_select %p394_p10, %s918_s27, 1 }
  0x29   : > { %830 = vset.pattern.permute.xlu0 %v861_v8  ;;  %831 = vset.pattern.permute.xlu1 %v861_v8  ;;  %v401_v11 = vld [vmem:[%s351_s26 + $0x18] sm:$0xff]  ;;  %v399_v13 = vld [vmem:[%s351_s26 + $0x8] sm:$0xff]  ;;  %v398_v14 = vld [vmem:[%s351_s26] sm:$0xff]  ;;  %vm537_vm1 = vcmask 1043456   ;;  %s784_s26 = sshll.u32 %s349_s30, 6  ;;  %s794_s24 = sshll.u32 (%p937_p5), %s918_s27, 3 }
  0x2a   : > { %441 = vperm.xlu0 %830, %v413_v9   ;;  %832 = vset.pattern.permute.xlu2 %v861_v8  ;;  %v402_v15 = vld [vmem:[%s1039_s2] sm:$0xff]  ;;  %v404_v16 = vld [vmem:[%s1039_s2 + $0x10] sm:$0xff]  ;;  %v403_v20 = vld [vmem:[%s1039_s2 + $0x8] sm:$0xff]  ;;  %s785_s11 = sshll.u32 %s395_s29, 2  ;;  %s387_s15 = scalar_lea.vmem [#allocation4], %s784_s26 }
  0x2b   : > { %431 = vperm.xlu1 %831, %v411_v10   ;;  %475 = vmatpush.msra.mxu0 %v401_v11  ;;  %v406_v17 = vld [vmem:[%s1039_s2 + $0x20] sm:$0xff]  ;;  %v410_v19 = vld [vmem:[%s1040_s3 + $0x10] sm:$0xff]  ;;  %v405_v21 = vld [vmem:[%s1039_s2 + $0x18] sm:$0xff]  ;;  %s397_s14 = scalar_lea.vmem %s1044_s7, %s785_s11  ;;  %s610_s17 = scalar_lea.vmem (%p937_p5), %s1043_s6, %s794_s24 }
  0x2c   : > { %797 = vmatpush.msra.mxu2 %v401_v11  ;;  %798 = vmatpush.msra.mxu3 %v401_v11  ;;  %v412_v18 = vld [vmem:[%s1040_s3 + $0x20] sm:$0xff]  ;;  %v407_v22 = vld [vmem:[%s1039_s2 + $0x28] sm:$0xff]  ;;  %v501_v33 = vld [vmem:[%s358_s22 + $0x18] sm:$0xff] }
  0x2d   : > { %476 = vmatpush.msra.mxu0 %v400_v12  ;;  %v409_v23 = vld [vmem:[%s1040_s3 + $0x8] sm:$0xff]  ;;  %v507_v24 = vld [vmem:[%s1042_s5] sm:$0xf]  ;;  %v500_v37 = vld [vmem:[%s358_s22 + $0x10] sm:$0xff] }
  0x2e   : > { %799 = vmatpush.msra.mxu2 %v400_v12  ;;  %800 = vmatpush.msra.mxu3 %v400_v12  ;;  %v408_v25 = vld [vmem:[%s1040_s3] sm:$0xff]  ;;  %v499_v40 = vld [vmem:[%s358_s22 + $0x8] sm:$0xff] }
  0x2f   : > { %477 = vmatpush.msra.mxu0 %v399_v13  ;;  %510 = vperm.xlu2 %832, %v507_v24   ;;  %v498_v43 = vld [vmem:[%s358_s22] sm:$0xff] }
  0x30   : > { %801 = vmatpush.msra.mxu2 %v399_v13  ;;  %802 = vmatpush.msra.mxu3 %v399_v13  ;;  %v506_v46 = vld [vmem:[%s1041_s4] sm:$0xf] }
  0x31   : > { %478 = vmatpush.msra.mxu0 %v398_v14 }
  0x32   : > { %803 = vmatpush.msra.mxu2 %v398_v14  ;;  %804 = vmatpush.msra.mxu3 %v398_v14 }
  0x33   : > { %786 = vmatmul.msk.f32.vlgmr.msra.gmra.mxu0 %vm444_vm0, %v402_v15  ;;  %788 = vmatmul.msk.f32.vlgmr.msra.gmra.mxu2 %vm444_vm0, %v404_v16 }
  0x34   : > { %790 = vmatmul.msk.f32.vlgmr.msra.gmra.mxu3 %vm444_vm0, %v406_v17  ;;  %436 = vperm.xlu0 %830, %v412_v18  }
  0x35   : > { %426 = vperm.xlu1 %831, %v410_v19  }
  0x37   : > { %416 = vperm.xlu2 %832, %v408_v25  }
  0x3b   : > { %787 = vmatmul.msk.f32.gmra.mxu0 %vm444_vm0, %v403_v20  ;;  %789 = vmatmul.msk.f32.gmra.mxu2 %vm444_vm0, %v405_v21 }
  0x3c   : > { %791 = vmatmul.msk.f32.gmra.mxu3 %vm444_vm0, %v407_v22  ;;  %421 = vperm.xlu0 %830, %v409_v23  }
  0x89   : > { %v511_v47 = vpop.permute.xlu2 %510 }
  0x91   : > { %v417_v12 = vpop.permute.xlu2 %416 }
  0x9c   : > { %v442_v26 = vpop.permute.xlu0 %441 }
  0x9d   : > { %v432_v27 = vpop.permute.xlu1 %431 }
  0xa6   : > { %v437_v30 = vpop.permute.xlu0 %436 }
  0xa7   : > { %v427_v36 = vpop.permute.xlu1 %426 }
  0xae   : > { %v422_v15 = vpop.permute.xlu0 %421 }
  0xb0   : > { %v480_v4 = vpop.f32.mrf.mxu0 }
  0xb1   : > { %v481_v18 = vadd.f32 %v480_v4, %v417_v12 }
  0xb6   : > { %v486_v28 = vpop.f32.mrf.mxu2 }
  0xb7   : > { %v492_v29 = vpop.f32.mrf.mxu3  ;;  %v487_v41 = vadd.f32 %v486_v28, %v427_v36 }
  0xb8   : > { %v493_v34 = vadd.f32 %v492_v29, %v437_v30  ;;  %v483_v16 = vpop.f32.mrf.mxu0 }
  0xb9   : > { %v502_v45 = vmul.f32 %v498_v43, %v487_v41  ;;  %v484_v23 = vadd.f32 %v483_v16, %v422_v15 }
  0xba   : > { %v504_v42 = vmul.f32 %v500_v37, %v493_v34 }
  0xbe   : > { %v489_v31 = vpop.f32.mrf.mxu2 }
  0xbf   : > { %v495_v32 = vpop.f32.mrf.mxu3  ;;  %v490_v38 = vadd.f32 %v489_v31, %v432_v27 }
  0xc0   : > { %v496_v35 = vadd.f32 %v495_v32, %v442_v26 }
  0xc1   : > { %v503_v44 = vmul.f32 %v499_v40, %v490_v38 }
  0xc2   : > { %v505_v39 = vmul.f32 %v501_v33, %v496_v35 }
  0xc4   : > { %528 = vmatpush.msra.mxu1 %v505_v39 }
  0xc6   : > { %529 = vmatpush.msra.mxu1 %v504_v42 }
  0xc8   : > { %530 = vmatpush.msra.mxu1 %v503_v44 }
  0xca   : > { %531 = vmatpush.msra.mxu1 %v502_v45 }
  0xcb   : > { %792 = vmatmul.msk.f32.vlgmr.msra.gmra.mxu1 %vm444_vm0, %v506_v46 }
 0x148   : > { %v533_v48 = vpop.f32.mrf.mxu1 }
 0x149   : > { %v534_v49 = vadd.f32 %v533_v48, %v511_v47 }
 0x14b   : > { %536 = vst [vmem:[%s397_s14] sm:$0xf] %v534_v49  ;;  %v538_v50 = vsel %vm537_vm1, %v534_v49, -inf }
 0x14c   : > { %v539_v51 = vrot.slane %v538_v50, 4 }
 0x14e   : > { %v540_v52 = vmax.f32 %v538_v50, %v539_v51 }
 0x150   : > { %v541_v53 = vrot.slane %v540_v52, 2 }
 0x152   : > { %v542_v54 = vmax.f32 %v540_v52, %v541_v53 }
 0x154   : > { %v543_v55 = vrot.slane %v542_v54, 1 }
 0x156   : > { %v544_v56 = vmax.f32 %v542_v54, %v543_v55 }
 0x158   : > { %v545_v57 = vsub.f32 %v534_v49, %v544_v56 }
 0x15a   : > { %v546_v58 = vmul.f32 1.442695, %v545_v57 }
 0x15c   : > { %833 = vpow2.f32 %v546_v58 }
 0x162   : > { %v834_v59 = vpop.eup %833 }
 0x163   : > { %v548_v60 = vsel %vm537_vm1, %v834_v59, 0.0 }
 0x164   : > { %v549_v61 = vrot.slane %v548_v60, 4 }
 0x166   : > { %v550_v62 = vadd.f32 %v549_v61, %v548_v60 }
 0x168   : > { %v551_v63 = vrot.slane %v550_v62, 2 }
 0x16a   : > { %v552_v0 = vadd.f32 %v551_v63, %v550_v62 }
 0x16c   : > { %v553_v1 = vrot.slane %v552_v0, 1 }
 0x16e   : > { %v554_v2 = vadd.f32 %v553_v1, %v552_v0 }
 0x170   : > { %835 = vrcp.f32 %v554_v2  ;;  %v566_v7 = vand.u32 2147483648, %v554_v2  ;;  %v564_v9 = vand.u32 2147483647, %v554_v2  ;;  %vm560_vm3 = vweird.f32 %v554_v2 }
 0x172   : > { %v567_v11 = vor.u32 1.1754944e-38, %v566_v7  ;;  %vm565_vm5 = vcmp.eq.f32.partialorder %v564_v9, 8.507059e+37 }
 0x176   : > { %v836_v3 = vpop.eup %835 }
 0x177   : > { %v556_v5 = vmul.f32 %v836_v3, %v554_v2  ;;  %vm561_vm2 = vweird.f32 %v836_v3 }
 0x178   : > { %vm562_vm4 = vmor %vm560_vm3, %vm561_vm2 }
 0x179   : > { %v557_v6 = vsub.f32 1.0, %v556_v5 }
 0x17b   : > { %v558_v8 = vmul.f32 %v836_v3, %v557_v6 }
 0x17d   : > { %v559_v10 = vadd.f32 %v836_v3, %v558_v8 }
 0x17f   : > { %v563_v13 = vsel %vm562_vm4, %v836_v3, %v559_v10 }
 0x180   : > { %v568_v14 = vsel %vm565_vm5, %v567_v11, %v563_v13 }
 0x181   : > { %v569_v17 = vmul.f32 %v834_v59, %v568_v14 }
 0x183   : > { %v571_v19 = vrot.slane %v569_v17, 1  ;;  %v572_v20 = vrot.slane %v569_v17, 2  ;;  %v573_v21 = vrot.slane %v569_v17, 3  ;;  %v574_v22 = vperm.slane %v569_v17, 0 }
 0x185   : > { %v575_v24 = vperm.slane %v571_v19, 0  ;;  %v576_v25 = vperm.slane %v572_v20, 0  ;;  %v577_v26 = vperm.slane %v573_v21, 0  ;;  %v582_v27 = vmul.f32 %v574_v22, %v481_v18 }
 0x186   : > { %v583_v28 = vmul.f32 %v574_v22, %v484_v23 }
 0x187   : > { %v584_v29 = vmul.f32 %v575_v24, %v481_v18  ;;  %v585_v30 = vmul.f32 %v575_v24, %v484_v23  ;;  %v586_v31 = vmul.f32 %v576_v25, %v481_v18  ;;  %590 = vst [vmem:[%s387_s15] sm:$0xff] %v582_v27  ;;  %v587_v32 = vmul.f32 %v576_v25, %v484_v23 }
 0x188   : > { %591 = vst [vmem:[%s387_s15 + $0x8] sm:$0xff] %v583_v28  ;;  %v588_v33 = vmul.f32 %v577_v26, %v481_v18  ;;  %v589_v34 = vmul.f32 %v577_v26, %v484_v23 }
 0x189   : > { %592 = vst [vmem:[%s387_s15 + $0x10] sm:$0xff] %v584_v29 }
 0x18a   : > { %593 = vst [vmem:[%s387_s15 + $0x18] sm:$0xff] %v585_v30  ;;  %608 = sbr.rel (!%p937_p5) target bundleno = 407 (0x197), region = 124 }
 0x18b   : > { %594 = vst [vmem:[%s387_s15 + $0x20] sm:$0xff] %v586_v31 }
 0x18c   : > { %595 = vst [vmem:[%s387_s15 + $0x28] sm:$0xff] %v587_v32 }
 0x18d   : > { %596 = vst [vmem:[%s387_s15 + $0x30] sm:$0xff] %v588_v33 }
 0x18e   : > { %597 = vst [vmem:[%s387_s15 + $0x38] sm:$0xff] %v589_v34  ;;  %v653_v35 = vld [vmem:[%s387_s15] sm:$0xff] (%p937_p5) }
 0x18f   : > { %v655_v36 = vld [vmem:[%s387_s15 + $0x8] sm:$0xff]  ;;  %654 = vst [vmem:[%s610_s17] sm:$0xff] %v653_v35 }
 0x190   : > { %v657_v37 = vld [vmem:[%s387_s15 + $0x10] sm:$0xff]  ;;  %656 = vst [vmem:[%s610_s17 + $0x10] sm:$0xff] %v655_v36 }
 0x191   : > { %v659_v38 = vld [vmem:[%s387_s15 + $0x18] sm:$0xff]  ;;  %658 = vst [vmem:[%s610_s17 + $0x20] sm:$0xff] %v657_v37 }
 0x192   : > { %v661_v39 = vld [vmem:[%s387_s15 + $0x20] sm:$0xff]  ;;  %660 = vst [vmem:[%s610_s17 + $0x30] sm:$0xff] %v659_v38 }
 0x193   : > { %v663_v40 = vld [vmem:[%s387_s15 + $0x28] sm:$0xff]  ;;  %662 = vst [vmem:[%s610_s17 + $0x40] sm:$0xff] %v661_v39 }
 0x194   : > { %v665_v41 = vld [vmem:[%s387_s15 + $0x30] sm:$0xff]  ;;  %664 = vst [vmem:[%s610_s17 + $0x50] sm:$0xff] %v663_v40 }
 0x195   : > { %v667_v42 = vld [vmem:[%s387_s15 + $0x38] sm:$0xff]  ;;  %666 = vst [vmem:[%s610_s17 + $0x60] sm:$0xff] %v665_v41 }
 0x196   : > { %668 = vst [vmem:[%s610_s17 + $0x70] sm:$0xff] %v667_v42 }
 0x197 PF: > { %p15_p11 = scmp.ge.s32.totalorder %s921_s28, 4   ;;  %s1047_s24 = smov %s855_s25 }
 0x198   : > { %s1048_s25 = smov %s931_s8  ;;  %s1049_s26 = smov %s921_s28 }
 0x199   :  { %17 = sbr.rel (!%p15_p11) target bundleno = 2 (0x2), region = 213 }

// kernel: lss_bevdepth_forward.3
= control target key start
LH: loop header
LB: loop body
LE: loop exit
PB: predicated region body
PF: predicated region fallthrough
CT: control target
= control target key end

     0   :  { %s1149_s9 = smov 0   ;;  %s1517_s0 = inlined_call_operand.vmem [shape: s32[2,1,512], index: 0, kind: input, shape index: {}]   ;;  %s1518_s1 = inlined_call_operand.vmem [shape: f32[2,16,512], index: 1, kind: input, shape index: {}]   ;;  %s1519_s2 = inlined_call_operand.vmem [shape: f32[2,16,256], index: 2, kind: output, shape index: {}]  }
   0x1 LB: > { %s846_s10 = sadd.s32 4294967295, %s1131_s9   ;;  %p850_p0 = scmp.ge.s32.totalorder %s1131_s9, 1  ;;  %s1131_s9 = sphi %s1149_s9, %s12_s9  }
   0x2   : > { %p121_p1 = scmp.lt.s32.totalorder %s1131_s9, 3 }
   0x4   : > { %p122_p2 = pnand %p850_p0, %p121_p1 }
   0x5   : > { %p147_p3 = scmp.lt.s32.totalorder (!%p122_p2), %s846_s10, 1 }
   0x6   : > { %125 = sbr.rel (%p122_p2) target bundleno = 290 (0x122), region = 28 }
   0xb   : > { %v170_v0 = vlaneseq  ;;  %s1521_s10 = smov (!%p147_p3, %s846_s10), 1  ;;  %v1133_v9 = vmov 1.0  }
   0xc   : > { %s851_s11 = sshll.u32 %s1521_s10, 2  ;;  %s1114_s15 = sshll.u32 %s1521_s10, 6 }
   0xd   : > { %v1159_v1 = vshrl.u32 %v170_v0, 7  ;;  %s150_s14 = scalar_lea.vmem %s1517_s0, %s851_s11  ;;  %s1353_s18 = scalar_lea.vmem %s1518_s1, %s1114_s15 }
   0xe   : > { %v161_v3 = vld [vmem:[%s150_s14] sm:$0xf]  ;;  %v1362_v28 = vld [vmem:[%s1353_s18 + $0x10] sm:$0xff]  ;;  %v1375_v30 = vld [vmem:[%s1353_s18 + $0x18] sm:$0xff]  ;;  %s1115_s19 = sshll.u32 %s1521_s10, 5 }
   0xf   : > { %v186_v2 = vadd.s32 120, %v1159_v1  ;;  %v185_v4 = vadd.s32 112, %v1159_v1  ;;  %v1167_v5 = vperm.slane %v161_v3, 2  ;;  %v1169_v6 = vperm.slane %v161_v3, 3  ;;  %v1378_v31 = vld [vmem:[%s1353_s18] sm:$0xff]  ;;  %v1381_v32 = vld [vmem:[%s1353_s18 + $0x8] sm:$0xff]  ;;  %s160_s22 = scalar_lea.vmem %s1519_s2, %s1115_s19 }
  0x10   : > { %v1171_v7 = vperm.slane %v161_v3, 0  ;;  %v1173_v8 = vperm.slane %v161_v3, 1  ;;  %v184_v10 = vadd.s32 104, %v1159_v1  ;;  %v183_v11 = vadd.s32 96, %v1159_v1  ;;  %v1396_v34 = vld [vmem:[%s1353_s18 + $0x30] sm:$0xff]  ;;  %v1409_v36 = vld [vmem:[%s1353_s18 + $0x38] sm:$0xff] }
  0x11   : > { %vm269_vm0 = vcmp.eq.s32.totalorder %v186_v2, %v1167_v5  ;;  %vm270_vm1 = vcmp.eq.s32.totalorder %v186_v2, %v1169_v6  ;;  %vm265_vm4 = vcmp.eq.s32.totalorder %v185_v4, %v1167_v5  ;;  %vm266_vm5 = vcmp.eq.s32.totalorder %v185_v4, %v1169_v6  ;;  %v1412_v37 = vld [vmem:[%s1353_s18 + $0x20] sm:$0xff]  ;;  %v1415_v38 = vld [vmem:[%s1353_s18 + $0x28] sm:$0xff] }
  0x12   : > { %vm267_vm2 = vcmp.eq.s32.totalorder %v186_v2, %v1171_v7  ;;  %vm268_vm3 = vcmp.eq.s32.totalorder %v186_v2, %v1173_v8  ;;  %1016 = vmatpush.xpose.msk.msra.mxu2 %vm269_vm0, %v1133_v9  ;;  %1032 = vmatpush.xpose.msk.msra.mxu3 %vm270_vm1, %v1133_v9  ;;  %vm263_vm6 = vcmp.eq.s32.totalorder %v185_v4, %v1171_v7  ;;  %v182_v12 = vadd.s32 88, %v1159_v1 }
  0x13   : > { %984 = vmatpush.xpose.msk.msra.mxu0 %vm267_vm2, %v1133_v9  ;;  %1000 = vmatpush.xpose.msk.msra.mxu1 %vm268_vm3, %v1133_v9  ;;  %vm264_vm7 = vcmp.eq.s32.totalorder %v185_v4, %v1173_v8  ;;  %vm261_vm8 = vcmp.eq.s32.totalorder %v184_v10, %v1167_v5  ;;  %vm262_vm9 = vcmp.eq.s32.totalorder %v184_v10, %v1169_v6  ;;  %v181_v13 = vadd.s32 80, %v1159_v1 }
  0x14   : > { %vm259_vm10 = vcmp.eq.s32.totalorder %v184_v10, %v1171_v7  ;;  %vm260_vm11 = vcmp.eq.s32.totalorder %v184_v10, %v1173_v8  ;;  %vm257_vm12 = vcmp.eq.s32.totalorder %v183_v11, %v1167_v5  ;;  %vm258_vm13 = vcmp.eq.s32.totalorder %v183_v11, %v1169_v6 }
  0x15   : > { %vm255_vm14 = vcmp.eq.s32.totalorder %v183_v11, %v1171_v7  ;;  %vm256_vm15 = vcmp.eq.s32.totalorder %v183_v11, %v1173_v8  ;;  %vm253_vm0 = vcmp.eq.s32.totalorder %v182_v12, %v1167_v5  ;;  %vm254_vm1 = vcmp.eq.s32.totalorder %v182_v12, %v1169_v6 }
  0x16   : > { %1017 = vmatpush.xpose.msk.msra.mxu2 %vm265_vm4, %v1133_v9  ;;  %1033 = vmatpush.xpose.msk.msra.mxu3 %vm266_vm5, %v1133_v9  ;;  %vm251_vm2 = vcmp.eq.s32.totalorder %v182_v12, %v1171_v7  ;;  %vm252_vm3 = vcmp.eq.s32.totalorder %v182_v12, %v1173_v8  ;;  %vm249_vm4 = vcmp.eq.s32.totalorder %v181_v13, %v1167_v5  ;;  %v180_v14 = vadd.s32 72, %v1159_v1 }
  0x17   : > { %985 = vmatpush.xpose.msk.msra.mxu0 %vm263_vm6, %v1133_v9  ;;  %1001 = vmatpush.xpose.msk.msra.mxu1 %vm264_vm7, %v1133_v9  ;;  %vm250_vm5 = vcmp.eq.s32.totalorder %v181_v13, %v1169_v6  ;;  %vm247_vm6 = vcmp.eq.s32.totalorder %v181_v13, %v1171_v7  ;;  %vm248_vm7 = vcmp.eq.s32.totalorder %v181_v13, %v1173_v8  ;;  %v179_v15 = vadd.s32 64, %v1159_v1 }
  0x18   : > { %v178_v16 = vadd.s32 56, %v1159_v1  ;;  %v177_v17 = vadd.s32 48, %v1159_v1  ;;  %v176_v18 = vadd.s32 40, %v1159_v1  ;;  %v175_v19 = vadd.s32 32, %v1159_v1 }
  0x19   : > { %v174_v20 = vadd.s32 24, %v1159_v1  ;;  %v173_v21 = vadd.s32 16, %v1159_v1  ;;  %v172_v22 = vadd.s32 8, %v1159_v1  ;;  %v202_v23 = vadd.s32 248, %v1159_v1 }
  0x1a   : > { %1018 = vmatpush.xpose.msk.msra.mxu2 %vm261_vm8, %v1133_v9  ;;  %1034 = vmatpush.xpose.msk.msra.mxu3 %vm262_vm9, %v1133_v9  ;;  %vm245_vm8 = vcmp.eq.s32.totalorder %v180_v14, %v1167_v5  ;;  %vm246_vm9 = vcmp.eq.s32.totalorder %v180_v14, %v1169_v6  ;;  %v201_v24 = vadd.s32 240, %v1159_v1  ;;  %v200_v25 = vadd.s32 232, %v1159_v1 }
  0x1b   : > { %986 = vmatpush.xpose.msk.msra.mxu0 %vm259_vm10, %v1133_v9  ;;  %1002 = vmatpush.xpose.msk.msra.mxu1 %vm260_vm11, %v1133_v9  ;;  %vm243_vm10 = vcmp.eq.s32.totalorder %v180_v14, %v1171_v7  ;;  %vm244_vm11 = vcmp.eq.s32.totalorder %v180_v14, %v1173_v8  ;;  %v199_v26 = vadd.s32 224, %v1159_v1  ;;  %v198_v27 = vadd.s32 216, %v1159_v1 }
  0x1c   : > { %v197_v29 = vadd.s32 208, %v1159_v1  ;;  %v196_v33 = vadd.s32 200, %v1159_v1  ;;  %v195_v35 = vadd.s32 192, %v1159_v1  ;;  %v194_v39 = vadd.s32 184, %v1159_v1 }
  0x1d   : > { %v193_v40 = vadd.s32 176, %v1159_v1  ;;  %v192_v41 = vadd.s32 168, %v1159_v1  ;;  %v191_v42 = vadd.s32 160, %v1159_v1  ;;  %v190_v43 = vadd.s32 152, %v1159_v1 }
  0x1e   : > { %1019 = vmatpush.xpose.msk.msra.mxu2 %vm257_vm12, %v1133_v9  ;;  %1035 = vmatpush.xpose.msk.msra.mxu3 %vm258_vm13, %v1133_v9  ;;  %vm241_vm12 = vcmp.eq.s32.totalorder %v179_v15, %v1167_v5  ;;  %vm242_vm13 = vcmp.eq.s32.totalorder %v179_v15, %v1169_v6  ;;  %v189_v44 = vadd.s32 144, %v1159_v1  ;;  %v188_v45 = vadd.s32 136, %v1159_v1 }
  0x1f   : > { %987 = vmatpush.xpose.msk.msra.mxu0 %vm255_vm14, %v1133_v9  ;;  %1003 = vmatpush.xpose.msk.msra.mxu1 %vm256_vm15, %v1133_v9  ;;  %vm239_vm14 = vcmp.eq.s32.totalorder %v179_v15, %v1171_v7  ;;  %vm240_vm15 = vcmp.eq.s32.totalorder %v179_v15, %v1173_v8  ;;  %v187_v46 = vadd.s32 128, %v1159_v1 }
  0x22   : > { %1020 = vmatpush.xpose.msk.msra.mxu2 %vm253_vm0, %v1133_v9  ;;  %1036 = vmatpush.xpose.msk.msra.mxu3 %vm254_vm1, %v1133_v9  ;;  %vm237_vm0 = vcmp.eq.s32.totalorder %v178_v16, %v1167_v5  ;;  %vm238_vm1 = vcmp.eq.s32.totalorder %v178_v16, %v1169_v6 }
  0x23   : > { %988 = vmatpush.xpose.msk.msra.mxu0 %vm251_vm2, %v1133_v9  ;;  %1004 = vmatpush.xpose.msk.msra.mxu1 %vm252_vm3, %v1133_v9  ;;  %vm235_vm2 = vcmp.eq.s32.totalorder %v178_v16, %v1171_v7  ;;  %vm236_vm3 = vcmp.eq.s32.totalorder %v178_v16, %v1173_v8 }
  0x26   : > { %1021 = vmatpush.xpose.msk.msra.mxu2 %vm249_vm4, %v1133_v9  ;;  %1037 = vmatpush.xpose.msk.msra.mxu3 %vm250_vm5, %v1133_v9  ;;  %vm233_vm4 = vcmp.eq.s32.totalorder %v177_v17, %v1167_v5  ;;  %vm234_vm5 = vcmp.eq.s32.totalorder %v177_v17, %v1169_v6 }
  0x27   : > { %989 = vmatpush.xpose.msk.msra.mxu0 %vm247_vm6, %v1133_v9  ;;  %1005 = vmatpush.xpose.msk.msra.mxu1 %vm248_vm7, %v1133_v9  ;;  %vm231_vm6 = vcmp.eq.s32.totalorder %v177_v17, %v1171_v7  ;;  %vm232_vm7 = vcmp.eq.s32.totalorder %v177_v17, %v1173_v8 }
  0x2a   : > { %1022 = vmatpush.xpose.msk.msra.mxu2 %vm245_vm8, %v1133_v9  ;;  %1038 = vmatpush.xpose.msk.msra.mxu3 %vm246_vm9, %v1133_v9  ;;  %vm229_vm8 = vcmp.eq.s32.totalorder %v176_v18, %v1167_v5  ;;  %vm230_vm9 = vcmp.eq.s32.totalorder %v176_v18, %v1169_v6 }
  0x2b   : > { %990 = vmatpush.xpose.msk.msra.mxu0 %vm243_vm10, %v1133_v9  ;;  %1006 = vmatpush.xpose.msk.msra.mxu1 %vm244_vm11, %v1133_v9  ;;  %vm227_vm10 = vcmp.eq.s32.totalorder %v176_v18, %v1171_v7  ;;  %vm228_vm11 = vcmp.eq.s32.totalorder %v176_v18, %v1173_v8 }
  0x2e   : > { %1023 = vmatpush.xpose.msk.msra.mxu2 %vm241_vm12, %v1133_v9  ;;  %1039 = vmatpush.xpose.msk.msra.mxu3 %vm242_vm13, %v1133_v9  ;;  %vm225_vm12 = vcmp.eq.s32.totalorder %v175_v19, %v1167_v5  ;;  %vm226_vm13 = vcmp.eq.s32.totalorder %v175_v19, %v1169_v6 }
  0x2f   : > { %991 = vmatpush.xpose.msk.msra.mxu0 %vm239_vm14, %v1133_v9  ;;  %1007 = vmatpush.xpose.msk.msra.mxu1 %vm240_vm15, %v1133_v9  ;;  %vm223_vm14 = vcmp.eq.s32.totalorder %v175_v19, %v1171_v7  ;;  %vm224_vm15 = vcmp.eq.s32.totalorder %v175_v19, %v1173_v8 }
  0x32   : > { %1024 = vmatpush.xpose.msk.msra.mxu2 %vm237_vm0, %v1133_v9  ;;  %1040 = vmatpush.xpose.msk.msra.mxu3 %vm238_vm1, %v1133_v9  ;;  %vm221_vm0 = vcmp.eq.s32.totalorder %v174_v20, %v1167_v5  ;;  %vm222_vm1 = vcmp.eq.s32.totalorder %v174_v20, %v1169_v6 }
  0x33   : > { %992 = vmatpush.xpose.msk.msra.mxu0 %vm235_vm2, %v1133_v9  ;;  %1008 = vmatpush.xpose.msk.msra.mxu1 %vm236_vm3, %v1133_v9  ;;  %vm219_vm2 = vcmp.eq.s32.totalorder %v174_v20, %v1171_v7  ;;  %vm220_vm3 = vcmp.eq.s32.totalorder %v174_v20, %v1173_v8 }
  0x36   : > { %1025 = vmatpush.xpose.msk.msra.mxu2 %vm233_vm4, %v1133_v9  ;;  %1041 = vmatpush.xpose.msk.msra.mxu3 %vm234_vm5, %v1133_v9  ;;  %vm217_vm4 = vcmp.eq.s32.totalorder %v173_v21, %v1167_v5  ;;  %vm218_vm5 = vcmp.eq.s32.totalorder %v173_v21, %v1169_v6 }
  0x37   : > { %993 = vmatpush.xpose.msk.msra.mxu0 %vm231_vm6, %v1133_v9  ;;  %1009 = vmatpush.xpose.msk.msra.mxu1 %vm232_vm7, %v1133_v9  ;;  %vm215_vm6 = vcmp.eq.s32.totalorder %v173_v21, %v1171_v7  ;;  %vm216_vm7 = vcmp.eq.s32.totalorder %v173_v21, %v1173_v8 }
  0x3a   : > { %1026 = vmatpush.xpose.msk.msra.mxu2 %vm229_vm8, %v1133_v9  ;;  %1042 = vmatpush.xpose.msk.msra.mxu3 %vm230_vm9, %v1133_v9  ;;  %vm213_vm8 = vcmp.eq.s32.totalorder %v172_v22, %v1167_v5  ;;  %vm214_vm9 = vcmp.eq.s32.totalorder %v172_v22, %v1169_v6 }
  0x3b   : > { %994 = vmatpush.xpose.msk.msra.mxu0 %vm227_vm10, %v1133_v9  ;;  %1010 = vmatpush.xpose.msk.msra.mxu1 %vm228_vm11, %v1133_v9  ;;  %vm211_vm10 = vcmp.eq.s32.totalorder %v172_v22, %v1171_v7  ;;  %vm212_vm11 = vcmp.eq.s32.totalorder %v172_v22, %v1173_v8 }
  0x3e   : > { %1027 = vmatpush.xpose.msk.msra.mxu2 %vm225_vm12, %v1133_v9  ;;  %1043 = vmatpush.xpose.msk.msra.mxu3 %vm226_vm13, %v1133_v9  ;;  %vm209_vm12 = vcmp.eq.s32.totalorder %v1159_v1, %v1167_v5  ;;  %vm210_vm13 = vcmp.eq.s32.totalorder %v1159_v1, %v1169_v6 }
  0x3f   : > { %995 = vmatpush.xpose.msk.msra.mxu0 %vm223_vm14, %v1133_v9  ;;  %1011 = vmatpush.xpose.msk.msra.mxu1 %vm224_vm15, %v1133_v9  ;;  %vm333_vm14 = vcmp.eq.s32.totalorder %v202_v23, %v1167_v5  ;;  %vm334_vm15 = vcmp.eq.s32.totalorder %v202_v23, %v1169_v6 }
  0x42   : > { %1028 = vmatpush.xpose.msk.msra.mxu2 %vm221_vm0, %v1133_v9  ;;  %1044 = vmatpush.xpose.msk.msra.mxu3 %vm222_vm1, %v1133_v9  ;;  %vm207_vm0 = vcmp.eq.s32.totalorder %v1159_v1, %v1171_v7  ;;  %vm208_vm1 = vcmp.eq.s32.totalorder %v1159_v1, %v1173_v8 }
  0x43   : > { %996 = vmatpush.xpose.msk.msra.mxu0 %vm219_vm2, %v1133_v9  ;;  %1012 = vmatpush.xpose.msk.msra.mxu1 %vm220_vm3, %v1133_v9  ;;  %vm331_vm2 = vcmp.eq.s32.totalorder %v202_v23, %v1171_v7  ;;  %vm332_vm3 = vcmp.eq.s32.totalorder %v202_v23, %v1173_v8 }
  0x46   : > { %1029 = vmatpush.xpose.msk.msra.mxu2 %vm217_vm4, %v1133_v9  ;;  %1045 = vmatpush.xpose.msk.msra.mxu3 %vm218_vm5, %v1133_v9  ;;  %vm329_vm4 = vcmp.eq.s32.totalorder %v201_v24, %v1167_v5  ;;  %vm330_vm5 = vcmp.eq.s32.totalorder %v201_v24, %v1169_v6 }
  0x47   : > { %997 = vmatpush.xpose.msk.msra.mxu0 %vm215_vm6, %v1133_v9  ;;  %1013 = vmatpush.xpose.msk.msra.mxu1 %vm216_vm7, %v1133_v9  ;;  %vm327_vm6 = vcmp.eq.s32.totalorder %v201_v24, %v1171_v7  ;;  %vm328_vm7 = vcmp.eq.s32.totalorder %v201_v24, %v1173_v8 }
  0x4a   : > { %1030 = vmatpush.xpose.msk.msra.mxu2 %vm213_vm8, %v1133_v9  ;;  %1046 = vmatpush.xpose.msk.msra.mxu3 %vm214_vm9, %v1133_v9  ;;  %vm325_vm8 = vcmp.eq.s32.totalorder %v200_v25, %v1167_v5  ;;  %vm326_vm9 = vcmp.eq.s32.totalorder %v200_v25, %v1169_v6 }
  0x4b   : > { %998 = vmatpush.xpose.msk.msra.mxu0 %vm211_vm10, %v1133_v9  ;;  %1014 = vmatpush.xpose.msk.msra.mxu1 %vm212_vm11, %v1133_v9  ;;  %vm323_vm10 = vcmp.eq.s32.totalorder %v200_v25, %v1171_v7  ;;  %vm324_vm11 = vcmp.eq.s32.totalorder %v200_v25, %v1173_v8 }
  0x4e   : > { %1031 = vmatpush.xpose.msk.msra.mxu2 %vm209_vm12, %v1133_v9  ;;  %1047 = vmatpush.xpose.msk.msra.mxu3 %vm210_vm13, %v1133_v9  ;;  %vm321_vm12 = vcmp.eq.s32.totalorder %v199_v26, %v1167_v5  ;;  %vm322_vm13 = vcmp.eq.s32.totalorder %v199_v26, %v1169_v6 }
  0x4f   : > { %999 = vmatpush.xpose.msk.msra.mxu0 %vm207_vm0, %v1133_v9  ;;  %1015 = vmatpush.xpose.msk.msra.mxu1 %vm208_vm1, %v1133_v9  ;;  %vm317_vm0 = vcmp.eq.s32.totalorder %v198_v27, %v1167_v5  ;;  %vm318_vm1 = vcmp.eq.s32.totalorder %v198_v27, %v1169_v6 }
  0x51   : > { %653 = vmatmul.f32.vlgmr.msra.gmra.mxu2 %v1362_v28  ;;  %676 = vmatmul.f32.vlgmr.msra.gmra.mxu3 %v1375_v30 }
  0x52   : > { %1080 = vmatpush.xpose.msk.msrb.mxu2 %vm333_vm14, %v1133_v9  ;;  %1096 = vmatpush.xpose.msk.msrb.mxu3 %vm334_vm15, %v1133_v9  ;;  %vm319_vm14 = vcmp.eq.s32.totalorder %v199_v26, %v1171_v7  ;;  %vm320_vm15 = vcmp.eq.s32.totalorder %v199_v26, %v1173_v8 }
  0x53   : > { %1048 = vmatpush.xpose.msk.msrb.mxu0 %vm331_vm2, %v1133_v9  ;;  %1064 = vmatpush.xpose.msk.msrb.mxu1 %vm332_vm3, %v1133_v9  ;;  %vm315_vm2 = vcmp.eq.s32.totalorder %v198_v27, %v1171_v7  ;;  %vm316_vm3 = vcmp.eq.s32.totalorder %v198_v27, %v1173_v8 }
  0x54   : > { %607 = vmatmul.f32.vlgmr.msra.gmra.mxu0 %v1378_v31  ;;  %630 = vmatmul.f32.vlgmr.msra.gmra.mxu1 %v1381_v32 }
  0x56   : > { %1081 = vmatpush.xpose.msk.msrb.mxu2 %vm329_vm4, %v1133_v9  ;;  %1097 = vmatpush.xpose.msk.msrb.mxu3 %vm330_vm5, %v1133_v9  ;;  %vm313_vm4 = vcmp.eq.s32.totalorder %v197_v29, %v1167_v5  ;;  %vm314_vm5 = vcmp.eq.s32.totalorder %v197_v29, %v1169_v6 }
  0x57   : > { %1049 = vmatpush.xpose.msk.msrb.mxu0 %vm327_vm6, %v1133_v9  ;;  %1065 = vmatpush.xpose.msk.msrb.mxu1 %vm328_vm7, %v1133_v9  ;;  %vm311_vm6 = vcmp.eq.s32.totalorder %v197_v29, %v1171_v7  ;;  %vm312_vm7 = vcmp.eq.s32.totalorder %v197_v29, %v1173_v8 }
  0x59   : > { %656 = vmatmul.f32.gmra.mxu2 %v1396_v34  ;;  %679 = vmatmul.f32.gmra.mxu3 %v1409_v36 }
  0x5a   : > { %1082 = vmatpush.xpose.msk.msrb.mxu2 %vm325_vm8, %v1133_v9  ;;  %1098 = vmatpush.xpose.msk.msrb.mxu3 %vm326_vm9, %v1133_v9  ;;  %vm309_vm8 = vcmp.eq.s32.totalorder %v196_v33, %v1167_v5  ;;  %vm310_vm9 = vcmp.eq.s32.totalorder %v196_v33, %v1169_v6 }
  0x5b   : > { %1050 = vmatpush.xpose.msk.msrb.mxu0 %vm323_vm10, %v1133_v9  ;;  %1066 = vmatpush.xpose.msk.msrb.mxu1 %vm324_vm11, %v1133_v9  ;;  %vm307_vm10 = vcmp.eq.s32.totalorder %v196_v33, %v1171_v7  ;;  %vm308_vm11 = vcmp.eq.s32.totalorder %v196_v33, %v1173_v8 }
  0x5c   : > { %610 = vmatmul.f32.gmra.mxu0 %v1412_v37  ;;  %633 = vmatmul.f32.gmra.mxu1 %v1415_v38 }
  0x5e   : > { %1083 = vmatpush.xpose.msk.msrb.mxu2 %vm321_vm12, %v1133_v9  ;;  %1099 = vmatpush.xpose.msk.msrb.mxu3 %vm322_vm13, %v1133_v9  ;;  %vm305_vm12 = vcmp.eq.s32.totalorder %v195_v35, %v1167_v5  ;;  %vm306_vm13 = vcmp.eq.s32.totalorder %v195_v35, %v1169_v6 }
  0x5f   : > { %1051 = vmatpush.xpose.msk.msrb.mxu0 %vm319_vm14, %v1133_v9  ;;  %1067 = vmatpush.xpose.msk.msrb.mxu1 %vm320_vm15, %v1133_v9  ;;  %vm303_vm14 = vcmp.eq.s32.totalorder %v195_v35, %v1171_v7  ;;  %vm304_vm15 = vcmp.eq.s32.totalorder %v195_v35, %v1173_v8 }
  0x62   : > { %1084 = vmatpush.xpose.msk.msrb.mxu2 %vm317_vm0, %v1133_v9  ;;  %1100 = vmatpush.xpose.msk.msrb.mxu3 %vm318_vm1, %v1133_v9  ;;  %vm301_vm0 = vcmp.eq.s32.totalorder %v194_v39, %v1167_v5  ;;  %vm302_vm1 = vcmp.eq.s32.totalorder %v194_v39, %v1169_v6 }
  0x63   : > { %1052 = vmatpush.xpose.msk.msrb.mxu0 %vm315_vm2, %v1133_v9  ;;  %1068 = vmatpush.xpose.msk.msrb.mxu1 %vm316_vm3, %v1133_v9  ;;  %vm299_vm2 = vcmp.eq.s32.totalorder %v194_v39, %v1171_v7  ;;  %vm300_vm3 = vcmp.eq.s32.totalorder %v194_v39, %v1173_v8 }
  0x66   : > { %1085 = vmatpush.xpose.msk.msrb.mxu2 %vm313_vm4, %v1133_v9  ;;  %1101 = vmatpush.xpose.msk.msrb.mxu3 %vm314_vm5, %v1133_v9  ;;  %vm297_vm4 = vcmp.eq.s32.totalorder %v193_v40, %v1167_v5  ;;  %vm298_vm5 = vcmp.eq.s32.totalorder %v193_v40, %v1169_v6 }
  0x67   : > { %1053 = vmatpush.xpose.msk.msrb.mxu0 %vm311_vm6, %v1133_v9  ;;  %1069 = vmatpush.xpose.msk.msrb.mxu1 %vm312_vm7, %v1133_v9  ;;  %vm295_vm6 = vcmp.eq.s32.totalorder %v193_v40, %v1171_v7  ;;  %vm296_vm7 = vcmp.eq.s32.totalorder %v193_v40, %v1173_v8 }
  0x6a   : > { %1086 = vmatpush.xpose.msk.msrb.mxu2 %vm309_vm8, %v1133_v9  ;;  %1102 = vmatpush.xpose.msk.msrb.mxu3 %vm310_vm9, %v1133_v9  ;;  %vm293_vm8 = vcmp.eq.s32.totalorder %v192_v41, %v1167_v5  ;;  %vm294_vm9 = vcmp.eq.s32.totalorder %v192_v41, %v1169_v6 }
  0x6b   : > { %1054 = vmatpush.xpose.msk.msrb.mxu0 %vm307_vm10, %v1133_v9  ;;  %1070 = vmatpush.xpose.msk.msrb.mxu1 %vm308_vm11, %v1133_v9  ;;  %vm291_vm10 = vcmp.eq.s32.totalorder %v192_v41, %v1171_v7  ;;  %vm292_vm11 = vcmp.eq.s32.totalorder %v192_v41, %v1173_v8 }
  0x6e   : > { %1087 = vmatpush.xpose.msk.msrb.mxu2 %vm305_vm12, %v1133_v9  ;;  %1103 = vmatpush.xpose.msk.msrb.mxu3 %vm306_vm13, %v1133_v9  ;;  %vm289_vm12 = vcmp.eq.s32.totalorder %v191_v42, %v1167_v5  ;;  %vm290_vm13 = vcmp.eq.s32.totalorder %v191_v42, %v1169_v6 }
  0x6f   : > { %1055 = vmatpush.xpose.msk.msrb.mxu0 %vm303_vm14, %v1133_v9  ;;  %1071 = vmatpush.xpose.msk.msrb.mxu1 %vm304_vm15, %v1133_v9  ;;  %vm287_vm14 = vcmp.eq.s32.totalorder %v191_v42, %v1171_v7  ;;  %vm288_vm15 = vcmp.eq.s32.totalorder %v191_v42, %v1173_v8 }
  0x72   : > { %1088 = vmatpush.xpose.msk.msrb.mxu2 %vm301_vm0, %v1133_v9  ;;  %1104 = vmatpush.xpose.msk.msrb.mxu3 %vm302_vm1, %v1133_v9  ;;  %vm285_vm0 = vcmp.eq.s32.totalorder %v190_v43, %v1167_v5  ;;  %vm286_vm1 = vcmp.eq.s32.totalorder %v190_v43, %v1169_v6 }
  0x73   : > { %1056 = vmatpush.xpose.msk.msrb.mxu0 %vm299_vm2, %v1133_v9  ;;  %1072 = vmatpush.xpose.msk.msrb.mxu1 %vm300_vm3, %v1133_v9  ;;  %vm283_vm2 = vcmp.eq.s32.totalorder %v190_v43, %v1171_v7  ;;  %vm284_vm3 = vcmp.eq.s32.totalorder %v190_v43, %v1173_v8 }
  0x76   : > { %1089 = vmatpush.xpose.msk.msrb.mxu2 %vm297_vm4, %v1133_v9  ;;  %1105 = vmatpush.xpose.msk.msrb.mxu3 %vm298_vm5, %v1133_v9  ;;  %vm281_vm4 = vcmp.eq.s32.totalorder %v189_v44, %v1167_v5  ;;  %vm282_vm5 = vcmp.eq.s32.totalorder %v189_v44, %v1169_v6 }
  0x77   : > { %1057 = vmatpush.xpose.msk.msrb.mxu0 %vm295_vm6, %v1133_v9  ;;  %1073 = vmatpush.xpose.msk.msrb.mxu1 %vm296_vm7, %v1133_v9  ;;  %vm279_vm6 = vcmp.eq.s32.totalorder %v189_v44, %v1171_v7  ;;  %vm280_vm7 = vcmp.eq.s32.totalorder %v189_v44, %v1173_v8 }
  0x7a   : > { %1090 = vmatpush.xpose.msk.msrb.mxu2 %vm293_vm8, %v1133_v9  ;;  %1106 = vmatpush.xpose.msk.msrb.mxu3 %vm294_vm9, %v1133_v9  ;;  %vm277_vm8 = vcmp.eq.s32.totalorder %v188_v45, %v1167_v5  ;;  %vm278_vm9 = vcmp.eq.s32.totalorder %v188_v45, %v1169_v6 }
  0x7b   : > { %1058 = vmatpush.xpose.msk.msrb.mxu0 %vm291_vm10, %v1133_v9  ;;  %1074 = vmatpush.xpose.msk.msrb.mxu1 %vm292_vm11, %v1133_v9  ;;  %vm275_vm10 = vcmp.eq.s32.totalorder %v188_v45, %v1171_v7  ;;  %vm276_vm11 = vcmp.eq.s32.totalorder %v188_v45, %v1173_v8 }
  0x7e   : > { %1091 = vmatpush.xpose.msk.msrb.mxu2 %vm289_vm12, %v1133_v9  ;;  %1107 = vmatpush.xpose.msk.msrb.mxu3 %vm290_vm13, %v1133_v9  ;;  %vm273_vm12 = vcmp.eq.s32.totalorder %v187_v46, %v1167_v5  ;;  %vm274_vm13 = vcmp.eq.s32.totalorder %v187_v46, %v1169_v6 }
  0x7f   : > { %1059 = vmatpush.xpose.msk.msrb.mxu0 %vm287_vm14, %v1133_v9  ;;  %1075 = vmatpush.xpose.msk.msrb.mxu1 %vm288_vm15, %v1133_v9  ;;  %vm271_vm14 = vcmp.eq.s32.totalorder %v187_v46, %v1171_v7  ;;  %vm272_vm15 = vcmp.eq.s32.totalorder %v187_v46, %v1173_v8 }
  0x82   : > { %1092 = vmatpush.xpose.msk.msrb.mxu2 %vm285_vm0, %v1133_v9  ;;  %1108 = vmatpush.xpose.msk.msrb.mxu3 %vm286_vm1, %v1133_v9 }
  0x83   : > { %1060 = vmatpush.xpose.msk.msrb.mxu0 %vm283_vm2, %v1133_v9  ;;  %1076 = vmatpush.xpose.msk.msrb.mxu1 %vm284_vm3, %v1133_v9 }
  0x86   : > { %1093 = vmatpush.xpose.msk.msrb.mxu2 %vm281_vm4, %v1133_v9  ;;  %1109 = vmatpush.xpose.msk.msrb.mxu3 %vm282_vm5, %v1133_v9 }
  0x87   : > { %1061 = vmatpush.xpose.msk.msrb.mxu0 %vm279_vm6, %v1133_v9  ;;  %1077 = vmatpush.xpose.msk.msrb.mxu1 %vm280_vm7, %v1133_v9 }
  0x8a   : > { %1094 = vmatpush.xpose.msk.msrb.mxu2 %vm277_vm8, %v1133_v9  ;;  %1110 = vmatpush.xpose.msk.msrb.mxu3 %vm278_vm9, %v1133_v9 }
  0x8b   : > { %1062 = vmatpush.xpose.msk.msrb.mxu0 %vm275_vm10, %v1133_v9  ;;  %1078 = vmatpush.xpose.msk.msrb.mxu1 %vm276_vm11, %v1133_v9 }
  0x8e   : > { %1095 = vmatpush.xpose.msk.msrb.mxu2 %vm273_vm12, %v1133_v9  ;;  %1111 = vmatpush.xpose.msk.msrb.mxu3 %vm274_vm13, %v1133_v9 }
  0x8f   : > { %1063 = vmatpush.xpose.msk.msrb.mxu0 %vm271_vm14, %v1133_v9  ;;  %1079 = vmatpush.xpose.msk.msrb.mxu1 %vm272_vm15, %v1133_v9 }
  0x91   : > { %745 = vmatmul.f32.vlgmr.msrb.gmra.mxu2 %v1362_v28  ;;  %768 = vmatmul.f32.vlgmr.msrb.gmra.mxu3 %v1375_v30 }
  0x92   : > { %699 = vmatmul.f32.vlgmr.msrb.gmra.mxu0 %v1378_v31  ;;  %722 = vmatmul.f32.vlgmr.msrb.gmra.mxu1 %v1381_v32 }
  0x99   : > { %748 = vmatmul.f32.gmra.mxu2 %v1396_v34  ;;  %771 = vmatmul.f32.gmra.mxu3 %v1409_v36 }
  0x9a   : > { %702 = vmatmul.f32.gmra.mxu0 %v1412_v37  ;;  %725 = vmatmul.f32.gmra.mxu1 %v1415_v38 }
  0xd1   : > { %v608_v47 = vpop.f32.mrf.mxu0  ;;  %v631_v48 = vpop.f32.mrf.mxu1 }
  0xd2   : > { %v632_v50 = vadd.f32 %v631_v48, %v608_v47 }
  0xd4   : > { %v654_v49 = vpop.f32.mrf.mxu2  ;;  %v677_v52 = vpop.f32.mrf.mxu3 }
  0xd5   : > { %v655_v51 = vadd.f32 %v654_v49, %v632_v50 }
  0xd7   : > { %v678_v53 = vadd.f32 %v677_v52, %v655_v51 }
  0xd9   : > { %v611_v54 = vpop.f32.mrf.mxu0  ;;  %775 = vst [vmem:[%s160_s22] sm:$0xff] %v678_v53  ;;  %v634_v55 = vpop.f32.mrf.mxu1 }
  0xda   : > { %v635_v57 = vadd.f32 %v634_v55, %v611_v54 }
  0xdc   : > { %v657_v56 = vpop.f32.mrf.mxu2  ;;  %v680_v59 = vpop.f32.mrf.mxu3 }
  0xdd   : > { %v658_v58 = vadd.f32 %v657_v56, %v635_v57 }
  0xdf   : > { %v681_v60 = vadd.f32 %v680_v59, %v658_v58 }
  0xe1   : > { %777 = vst [vmem:[%s160_s22 + $0x10] sm:$0xff] %v681_v60 }
 0x10f   : > { %v700_v61 = vpop.f32.mrf.mxu0  ;;  %v723_v62 = vpop.f32.mrf.mxu1 }
 0x110   : > { %v724_v63 = vadd.f32 %v723_v62, %v700_v61 }
 0x114   : > { %v746_v0 = vpop.f32.mrf.mxu2  ;;  %v769_v1 = vpop.f32.mrf.mxu3 }
 0x115   : > { %v747_v2 = vadd.f32 %v746_v0, %v724_v63 }
 0x117   : > { %v770_v3 = vadd.f32 %v769_v1, %v747_v2  ;;  %v703_v4 = vpop.f32.mrf.mxu0  ;;  %v726_v5 = vpop.f32.mrf.mxu1 }
 0x118   : > { %v727_v6 = vadd.f32 %v726_v5, %v703_v4 }
 0x119   : > { %776 = vst [vmem:[%s160_s22 + $0x8] sm:$0xff] %v770_v3 }
 0x11c   : > { %v749_v7 = vpop.f32.mrf.mxu2  ;;  %v772_v8 = vpop.f32.mrf.mxu3 }
 0x11d   : > { %v750_v9 = vadd.f32 %v749_v7, %v727_v6 }
 0x11f   : > { %v773_v10 = vadd.f32 %v772_v8, %v750_v9 }
 0x121   : > { %778 = vst [vmem:[%s160_s22 + $0x18] sm:$0xff] %v773_v10 }
 0x122 PF: > { %s12_s9 = sadd.s32 1, %s1131_s9  }
 0x123   : > { %p9_p4 = scmp.ge.s32.totalorder %s12_s9, 4  }
 0x125   :  { %11 = sbr.rel (!%p9_p4) target bundleno = 1 (0x1), region = 61 }

</bundles_post_ra>
